<compile_context>
chip_gen: v5e
topology: v5e:2x2
jax: 0.10.0
libtpu: 0.0.40
codegen_flags: <defaults>
</compile_context>

<pallas_src>
import functools

import jax
import jax.numpy as jnp
from jax.experimental import pallas as pl
from jax.experimental.pallas import tpu as pltpu


def _round_up(v, m):
    return (v + m - 1) // m * m


def _sublane_pack(compute_dtype):
    # rows per 32-bit sublane group: 8 for f32, 16 for bf16.
    return 32 // jnp.dtype(compute_dtype).itemsize


def _channel_pad(cin_total, compute_dtype):
    return _round_up(cin_total, _sublane_pack(compute_dtype))


def pack_conv_lstm_params(weight, bias, input_dim, kernel_size,
                          compute_dtype=jnp.float32):
    """One-time (per layer) repack of the PyTorch Conv2d weight/bias.

    weight : (4*HD, Cin+HD, K, K)  OIHW
    bias   : (4*HD,)
    Returns w2 of shape (4*HD, K*K*CINP + BCOL):
      * columns tap-major, channel order [h_prev, x, zero-pad] per tap,
      * the last BCOL columns hold the bias in column 0 (zeros elsewhere),
        matched in-kernel by a ones row appended to im2col (bias folded into
        the matmul -> no separate 1-lane bias operand).
    """
    out_ch, cin_total, K, K2 = weight.shape
    assert K == K2 == kernel_size
    Cin = input_dim
    CINP = _channel_pad(cin_total, compute_dtype)
    KKC = K * K * CINP
    BCOL = _sublane_pack(compute_dtype)

    wt = jnp.transpose(weight, (0, 2, 3, 1))                        # (O,K,K,CIN)
    wt = jnp.concatenate([wt[..., Cin:], wt[..., :Cin]], axis=-1)   # [h, x]
    wt = jnp.pad(wt, ((0, 0), (0, 0), (0, 0), (0, CINP - cin_total)))
    w_flat = wt.reshape(out_ch, KKC)
    bcols = jnp.zeros((out_ch, BCOL), weight.dtype).at[:, 0].set(bias)
    return jnp.concatenate([w_flat, bcols], axis=-1).astype(compute_dtype)


def _convlstm_kernel(x_ref, h_ref, c_prev_ref, w_ref,
                     h_out_ref, c_out_ref, padbuf, im2col,
                     *, Cin, HD, H, W, K, CINP, LPAD, Bt, KKC, BCOL):
    """Bt batch elements per grid step.  Spatial data is (channels, H*W).

    x_ref      : (Bt, Cin, H*W)           input dtype (cast in-kernel)
    h_ref      : (Bt, HD, H*W)
    c_prev_ref : (Bt, HD, H*W)            f32
    w_ref      : (4*HD, K*K*CINP + BCOL)  packed weights (+bias column)
    h_out_ref  : (Bt, HD, H*W)            f32
    c_out_ref  : (Bt, HD, H*W)            f32
    padbuf     : (Bt*CINP, LPAD + H*W + LPAD)   zero-padded combined input
    im2col     : (K*K*CINP + BCOL, Bt*H*W)      one column per output pixel
    """
    HW = H * W
    CIN = Cin + HD
    p = K // 2
    cd = padbuf.dtype

    # ---- zero ONLY the halo columns (row/'same' padding); the data region is
    #      fully overwritten below.  Per-step (scratch is per-core; no pid gate).
    padbuf[:, :LPAD] = jnp.zeros((Bt * CINP, LPAD), cd)
    padbuf[:, LPAD + HW:] = jnp.zeros((Bt * CINP, LPAD), cd)

    # ---- combined input, channel order [h_prev, x, zero-pad] (matches w_ref),
    #      cast to the compute dtype on the way into VMEM.
    for b in range(Bt):
        r0 = b * CINP
        padbuf[r0:r0 + HD, LPAD:LPAD + HW] = h_ref[b].astype(cd)
        padbuf[r0 + HD:r0 + CIN, LPAD:LPAD + HW] = x_ref[b].astype(cd)
        if CINP > CIN:
            padbuf[r0 + CIN:r0 + CINP, LPAD:LPAD + HW] = jnp.zeros(
                (CINP - CIN, HW), cd)

    # ---- width-boundary masks, hoisted out of the tap loop (flattened rows
    #      wrap horizontally; columns leaving [0, W) after the kx shift must
    #      be zeroed).  At most 2*p distinct masks.
    col = jax.lax.broadcasted_iota(jnp.int32, (1, HW), 1) % W
    edge_mask = {dx: (col + dx >= 0) & (col + dx < W)
                 for dx in range(-p, p + 1) if dx != 0}

    # ---- im2col: fuse all K*K taps into a single contraction dimension.
    for b in range(Bt):
        r0 = b * CINP
        l0 = b * HW
        for ky in range(K):
            for kx in range(K):
                tap = ky * K + kx
                off = (ky - p) * W + (kx - p)
                win = padbuf[r0:r0 + CINP, LPAD + off:LPAD + off + HW]
                dx = kx - p
                if dx != 0:
                    win = jnp.where(edge_mask[dx], win, jnp.zeros_like(win))
                im2col[tap * CINP:(tap + 1) * CINP, l0:l0 + HW] = win

    # ---- bias rows: row KKC is ones, rest of the block is zeros, matching
    #      the bias column folded into w_ref -> bias applied inside the matmul.
    rid = jax.lax.broadcasted_iota(jnp.int32, (BCOL, Bt * HW), 0)
    im2col[KKC:KKC + BCOL, :] = (rid == 0).astype(cd)

    # ---- one fused MXU matmul; accumulation and gate math stay f32.
    acc = jnp.dot(w_ref[...], im2col[...],
                  preferred_element_type=jnp.float32)       # (4*HD, Bt*HW)

    # Gate order matches torch.chunk(conv_output, 4, dim=1): [i, f, o, g].
    i_g = jax.nn.sigmoid(acc[0 * HD:1 * HD])
    f_g = jax.nn.sigmoid(acc[1 * HD:2 * HD])
    o_g = jax.nn.sigmoid(acc[2 * HD:3 * HD])
    g_g = jnp.tanh(acc[3 * HD:4 * HD])

    for b in range(Bt):
        s = slice(b * HW, (b + 1) * HW)                     # 128-aligned lanes
        c_b = f_g[:, s] * c_prev_ref[b] + i_g[:, s] * g_g[:, s]
        h_b = o_g[:, s] * jnp.tanh(c_b)
        c_out_ref[b] = c_b                                  # lane-dense stores
        h_out_ref[b] = h_b


def conv_lstm_cell_packed(x, h_prev, c_prev, w2, *, hidden_dim, kernel_size,
                          compute_dtype=jnp.float32, batch_tile=None):
    """Pallas ConvLSTMCell forward with pre-packed weights (see pack_*)."""
    B, Cin, H, W = x.shape
    HD = hidden_dim
    K = kernel_size
    # TODO(synk): even kernel_size needs asymmetric padding to match PyTorch's
    # padding=K//2 output size; only odd K is supported here.
    assert K % 2 == 1, "only odd kernel_size supported"
    HW = H * W
    # TODO(synk): pad the spatial axis when H*W is not a multiple of 128.
    assert HW % 128 == 0, "H*W must be a multiple of 128"

    Bt = B if batch_tile is None else batch_tile
    assert B % Bt == 0, "batch must be divisible by batch_tile"

    CIN = Cin + HD
    CINP = _channel_pad(CIN, compute_dtype)
    KKC = K * K * CINP
    BCOL = _sublane_pack(compute_dtype)
    LPAD = _round_up((K // 2) * W + (K // 2), 128)          # lane-aligned halo
    assert w2.shape == (4 * HD, KKC + BCOL), "w2 packed with wrong params"

    # Free reshapes only — no transpose / concat / pad / cast passes in HBM.
    x_f = x.reshape(B, Cin, HW)
    h_f = h_prev.reshape(B, HD, HW)
    c_f = c_prev.reshape(B, HD, HW).astype(jnp.float32)

    kernel = functools.partial(_convlstm_kernel, Cin=Cin, HD=HD, H=H, W=W,
                               K=K, CINP=CINP, LPAD=LPAD, Bt=Bt, KKC=KKC,
                               BCOL=BCOL)

    h_out, c_out = pl.pallas_call(
        kernel,
        out_shape=(
            jax.ShapeDtypeStruct((B, HD, HW), jnp.float32),
            jax.ShapeDtypeStruct((B, HD, HW), jnp.float32),
        ),
        grid_spec=pltpu.PrefetchScalarGridSpec(
            num_scalar_prefetch=0,
            grid=(B // Bt,),
            in_specs=[
                pl.BlockSpec((Bt, Cin, HW), lambda b: (b, 0, 0)),
                pl.BlockSpec((Bt, HD, HW), lambda b: (b, 0, 0)),
                pl.BlockSpec((Bt, HD, HW), lambda b: (b, 0, 0)),
                # grid-invariant packed weights (constant index_map -> 1 fetch)
                pl.BlockSpec((4 * HD, KKC + BCOL), lambda b: (0, 0)),
            ],
            out_specs=[
                pl.BlockSpec((Bt, HD, HW), lambda b: (b, 0, 0)),
                pl.BlockSpec((Bt, HD, HW), lambda b: (b, 0, 0)),
            ],
            scratch_shapes=[
                pltpu.VMEM((Bt * CINP, LPAD + HW + LPAD), compute_dtype),
                pltpu.VMEM((KKC + BCOL, Bt * HW), compute_dtype),
            ],
        ),
        compiler_params=pltpu.CompilerParams(
            dimension_semantics=("parallel",)),
    )(x_f, h_f, c_f, w2)

    return h_out.reshape(B, HD, H, W), c_out.reshape(B, HD, H, W)


def conv_lstm_cell(x, h_prev, c_prev, weight, bias, kernel_size, *,
                   compute_dtype=jnp.float32, batch_tile=None):
    """Convenience wrapper (packs weights per call; prefer packing once)."""
    w2 = pack_conv_lstm_params(weight, bias, x.shape[1], kernel_size,
                               compute_dtype)
    return conv_lstm_cell_packed(x, h_prev, c_prev, w2,
                                 hidden_dim=h_prev.shape[1],
                                 kernel_size=kernel_size,
                                 compute_dtype=compute_dtype,
                                 batch_tile=batch_tile)


def conv_lstm_cell_ref(x, h_prev, c_prev, weight, bias):
    """Pure-JAX reference matching the PyTorch module exactly."""
    combined = jnp.concatenate([x, h_prev], axis=1)
    conv_out = jax.lax.conv_general_dilated(
        combined, weight, window_strides=(1, 1), padding="SAME",
        dimension_numbers=("NCHW", "OIHW", "NCHW"),
        precision=jax.lax.Precision.HIGHEST)
    conv_out = conv_out + bias[None, :, None, None]
    cc_i, cc_f, cc_o, cc_g = jnp.split(conv_out, 4, axis=1)
    i = jax.nn.sigmoid(cc_i)
    f = jax.nn.sigmoid(cc_f)
    o = jax.nn.sigmoid(cc_o)
    g = jnp.tanh(cc_g)
    c = f * c_prev + i * g
    h = o * jnp.tanh(c)
    return h, c


if __name__ == "__main__":
    # Small deterministic setup consistent with the module:
    #   input_dim=4, hidden_dim=8, kernel_size=3, batch=2, spatial=16x16
    B, CIN_X, HD, H, W, K = 2, 4, 8, 16, 16, 3

    key = jax.random.PRNGKey(0)
    kx_, kh_, kc_, kw_, kb_ = jax.random.split(key, 5)

    x = jax.random.normal(kx_, (B, CIN_X, H, W), dtype=jnp.float32)
    h_prev = jax.random.normal(kh_, (B, HD, H, W), dtype=jnp.float32)
    c_prev = jax.random.normal(kc_, (B, HD, H, W), dtype=jnp.float32)

    fan_in = (CIN_X + HD) * K * K
    bound = 1.0 / jnp.sqrt(jnp.float32(fan_in))
    weight = jax.random.uniform(kw_, (4 * HD, CIN_X + HD, K, K),
                                minval=-bound, maxval=bound, dtype=jnp.float32)
    bias = jax.random.uniform(kb_, (4 * HD,),
                              minval=-bound, maxval=bound, dtype=jnp.float32)

    h_ref, c_ref = conv_lstm_cell_ref(x, h_prev, c_prev, weight, bias)

    # ---- f32 operand path: whole batch in one grid step (grid=(1,)) --------
    w2_f32 = pack_conv_lstm_params(weight, bias, CIN_X, K, jnp.float32)
    fwd_f32 = jax.jit(functools.partial(
        conv_lstm_cell_packed, hidden_dim=HD, kernel_size=K,
        compute_dtype=jnp.float32))
    h_out, c_out = fwd_f32(x, h_prev, c_prev, w2_f32)
    jax.block_until_ready((h_out, c_out))
    assert jnp.allclose(h_out, h_ref, atol=1e-3, rtol=1e-3), "h mismatch (f32)"
    assert jnp.allclose(c_out, c_ref, atol=1e-3, rtol=1e-3), "c mismatch (f32)"

    # ---- bf16 operand path, batch_tile=1 (exercises grid=(2,) / megacore) --
    # Gate/elementwise math stays f32; inputs are cast in-kernel (no HBM pass).
    w2_bf = pack_conv_lstm_params(weight, bias, CIN_X, K, jnp.bfloat16)
    fwd_bf = jax.jit(functools.partial(
        conv_lstm_cell_packed, hidden_dim=HD, kernel_size=K,
        compute_dtype=jnp.bfloat16, batch_tile=1))
    h_bf, c_bf = fwd_bf(x, h_prev, c_prev, w2_bf)
    jax.block_until_ready((h_bf, c_bf))
    assert jnp.allclose(h_bf, h_ref, atol=1e-1, rtol=1e-1), "h mismatch (bf16)"
    assert jnp.allclose(c_bf, c_ref, atol=1e-1, rtol=1e-1), "c mismatch (bf16)"

    print("KERNEL_OK")
</pallas_src>

<mosaic_0001>
module attributes {stable_mosaic.version = 11 : i64} {
  func.func @_convlstm_kernel(%arg0: i32, %arg1: memref<2x4x256xf32, #tpu.memory_space<vmem>>, %arg2: memref<2x8x256xf32, #tpu.memory_space<vmem>>, %arg3: memref<2x8x256xf32, #tpu.memory_space<vmem>>, %arg4: memref<32x152xf32, #tpu.memory_space<vmem>>, %arg5: memref<2x8x256xf32, #tpu.memory_space<vmem>>, %arg6: memref<2x8x256xf32, #tpu.memory_space<vmem>>, %arg7: memref<32x512xf32, #tpu.memory_space<vmem>>, %arg8: memref<152x512xf32, #tpu.memory_space<vmem>>) attributes {dimension_semantics = [#tpu.dimension_semantics<parallel>], iteration_bounds = array<i64: 1>, scalar_prefetch = 0 : i64, scratch_operands = 2 : i64, tpu.core_type = #tpu.core_type<tc>, window_params = [{transform_indices = @transform_0, window_bounds = array<i64: 2, 4, 256>}, {transform_indices = @transform_1, window_bounds = array<i64: 2, 8, 256>}, {transform_indices = @transform_2, window_bounds = array<i64: 2, 8, 256>}, {pipeline_mode = #tpu.pipeline_mode<synchronous>, transform_indices = @transform_3, window_bounds = array<i64: 32, 152>}, {transform_indices = @transform_4, window_bounds = array<i64: 2, 8, 256>}, {transform_indices = @transform_5, window_bounds = array<i64: 2, 8, 256>}]} {
    %cst = arith.constant 0.000000e+00 : f32
    %0 = vector.broadcast %cst : f32 to vector<32x128xf32>
    %c0 = arith.constant 0 : index
    %c0_0 = arith.constant 0 : index
    %1 = vector.load %arg7[%c0, %c0_0] : memref<32x512xf32, #tpu.memory_space<vmem>>, vector<32x128xf32>
    tpu.vector_store %arg7[%c0, %c0_0], %0 {strides = array<i32>} : memref<32x512xf32, #tpu.memory_space<vmem>>, vector<32x128xf32>,
    %cst_1 = arith.constant 0.000000e+00 : f32
    %2 = vector.broadcast %cst_1 : f32 to vector<32x128xf32>
    %c0_2 = arith.constant 0 : index
    %c384 = arith.constant 384 : index
    %3 = vector.load %arg7[%c0_2, %c384] : memref<32x512xf32, #tpu.memory_space<vmem>>, vector<32x128xf32>
    tpu.vector_store %arg7[%c0_2, %c384], %2 {strides = array<i32>} : memref<32x512xf32, #tpu.memory_space<vmem>>, vector<32x128xf32>,
    %c0_3 = arith.constant 0 : index
    %c0_4 = arith.constant 0 : index
    %c0_5 = arith.constant 0 : index
    %4 = vector.load %arg2[%c0_3, %c0_4, %c0_5] : memref<2x8x256xf32, #tpu.memory_space<vmem>>, vector<1x8x256xf32>
    %5 = vector.shape_cast %4 : vector<1x8x256xf32> to vector<8x256xf32>
    %c0_6 = arith.constant 0 : index
    %c128 = arith.constant 128 : index
    %6 = vector.load %arg7[%c0_6, %c128] : memref<32x512xf32, #tpu.memory_space<vmem>>, vector<8x256xf32>
    tpu.vector_store %arg7[%c0_6, %c128], %5 {strides = array<i32>} : memref<32x512xf32, #tpu.memory_space<vmem>>, vector<8x256xf32>,
    %c0_7 = arith.constant 0 : index
    %c0_8 = arith.constant 0 : index
    %c0_9 = arith.constant 0 : index
    %7 = vector.load %arg1[%c0_7, %c0_8, %c0_9] : memref<2x4x256xf32, #tpu.memory_space<vmem>>, vector<1x4x256xf32>
    %8 = vector.shape_cast %7 : vector<1x4x256xf32> to vector<4x256xf32>
    %c8 = arith.constant 8 : index
    %c128_10 = arith.constant 128 : index
    %9 = vector.load %arg7[%c8, %c128_10] : memref<32x512xf32, #tpu.memory_space<vmem>>, vector<4x256xf32>
    tpu.vector_store %arg7[%c8, %c128_10], %8 {strides = array<i32>} : memref<32x512xf32, #tpu.memory_space<vmem>>, vector<4x256xf32>,
    %cst_11 = arith.constant 0.000000e+00 : f32
    %10 = vector.broadcast %cst_11 : f32 to vector<4x256xf32>
    %c12 = arith.constant 12 : index
    %c128_12 = arith.constant 128 : index
    %11 = vector.load %arg7[%c12, %c128_12] : memref<32x512xf32, #tpu.memory_space<vmem>>, vector<4x256xf32>
    tpu.vector_store %arg7[%c12, %c128_12], %10 {strides = array<i32>} : memref<32x512xf32, #tpu.memory_space<vmem>>, vector<4x256xf32>,
    %c1 = arith.constant 1 : index
    %c0_13 = arith.constant 0 : index
    %c0_14 = arith.constant 0 : index
    %12 = vector.load %arg2[%c1, %c0_13, %c0_14] : memref<2x8x256xf32, #tpu.memory_space<vmem>>, vector<1x8x256xf32>
    %13 = vector.shape_cast %12 : vector<1x8x256xf32> to vector<8x256xf32>
    %c16 = arith.constant 16 : index
    %c128_15 = arith.constant 128 : index
    %14 = vector.load %arg7[%c16, %c128_15] : memref<32x512xf32, #tpu.memory_space<vmem>>, vector<8x256xf32>
    tpu.vector_store %arg7[%c16, %c128_15], %13 {strides = array<i32>} : memref<32x512xf32, #tpu.memory_space<vmem>>, vector<8x256xf32>,
    %c1_16 = arith.constant 1 : index
    %c0_17 = arith.constant 0 : index
    %c0_18 = arith.constant 0 : index
    %15 = vector.load %arg1[%c1_16, %c0_17, %c0_18] : memref<2x4x256xf32, #tpu.memory_space<vmem>>, vector<1x4x256xf32>
    %16 = vector.shape_cast %15 : vector<1x4x256xf32> to vector<4x256xf32>
    %c24 = arith.constant 24 : index
    %c128_19 = arith.constant 128 : index
    %17 = vector.load %arg7[%c24, %c128_19] : memref<32x512xf32, #tpu.memory_space<vmem>>, vector<4x256xf32>
    tpu.vector_store %arg7[%c24, %c128_19], %16 {strides = array<i32>} : memref<32x512xf32, #tpu.memory_space<vmem>>, vector<4x256xf32>,
    %cst_20 = arith.constant 0.000000e+00 : f32
    %18 = vector.broadcast %cst_20 : f32 to vector<4x256xf32>
    %c28 = arith.constant 28 : index
    %c128_21 = arith.constant 128 : index
    %19 = vector.load %arg7[%c28, %c128_21] : memref<32x512xf32, #tpu.memory_space<vmem>>, vector<4x256xf32>
    tpu.vector_store %arg7[%c28, %c128_21], %18 {strides = array<i32>} : memref<32x512xf32, #tpu.memory_space<vmem>>, vector<4x256xf32>,
    %20 = tpu.iota {dimensions = array<i32: 1>} : vector<1x256xi32>
    %c16_i32 = arith.constant 16 : i32
    %c0_i32 = arith.constant 0 : i32
    %21 = arith.cmpi eq, %c16_i32, %c0_i32 : i32
    %c1_i32 = arith.constant 1 : i32
    %22 = arith.select %21, %c1_i32, %c16_i32 : i32
    %23 = vector.broadcast %22 : i32 to vector<1x256xi32>
    %24 = arith.remsi %20, %23 : vector<1x256xi32>
    %c0_i32_22 = arith.constant 0 : i32
    %25 = vector.broadcast %c0_i32_22 : i32 to vector<1x256xi32>
    %26 = arith.cmpi ne, %24, %25 : vector<1x256xi32>
    %c0_i32_23 = arith.constant 0 : i32
    %27 = vector.broadcast %c0_i32_23 : i32 to vector<1x256xi32>
    %28 = arith.cmpi slt, %24, %27 : vector<1x256xi32>
    %c0_i32_24 = arith.constant 0 : i32
    %29 = arith.cmpi slt, %22, %c0_i32_24 : i32
    %30 = vector.broadcast %29 : i1 to vector<1x256xi1>
    %31 = vector.broadcast %30 : vector<1x256xi1> to vector<1x256xi1>
    %32 = arith.xori %28, %31 : vector<1x256xi1>
    %33 = arith.andi %32, %26 : vector<1x256xi1>
    %34 = vector.broadcast %22 : i32 to vector<1x256xi32>
    %35 = arith.addi %24, %34 : vector<1x256xi32>
    %36 = arith.select %33, %35, %24 : vector<1x256xi1>, vector<1x256xi32>
    %c-1_i32 = arith.constant -1 : i32
    %37 = vector.broadcast %c-1_i32 : i32 to vector<1x256xi32>
    %38 = arith.addi %36, %37 : vector<1x256xi32>
    %c0_i32_25 = arith.constant 0 : i32
    %39 = vector.broadcast %c0_i32_25 : i32 to vector<1x256xi32>
    %40 = arith.cmpi sge, %38, %39 : vector<1x256xi32>
    %c-1_i32_26 = arith.constant -1 : i32
    %41 = vector.broadcast %c-1_i32_26 : i32 to vector<1x256xi32>
    %42 = arith.addi %36, %41 : vector<1x256xi32>
    %c16_i32_27 = arith.constant 16 : i32
    %43 = vector.broadcast %c16_i32_27 : i32 to vector<1x256xi32>
    %44 = arith.cmpi slt, %42, %43 : vector<1x256xi32>
    %45 = arith.andi %40, %44 : vector<1x256xi1>
    %c1_i32_28 = arith.constant 1 : i32
    %46 = vector.broadcast %c1_i32_28 : i32 to vector<1x256xi32>
    %47 = arith.addi %36, %46 : vector<1x256xi32>
    %c0_i32_29 = arith.constant 0 : i32
    %48 = vector.broadcast %c0_i32_29 : i32 to vector<1x256xi32>
    %49 = arith.cmpi sge, %47, %48 : vector<1x256xi32>
    %c1_i32_30 = arith.constant 1 : i32
    %50 = vector.broadcast %c1_i32_30 : i32 to vector<1x256xi32>
    %51 = arith.addi %36, %50 : vector<1x256xi32>
    %c16_i32_31 = arith.constant 16 : i32
    %52 = vector.broadcast %c16_i32_31 : i32 to vector<1x256xi32>
    %53 = arith.cmpi slt, %51, %52 : vector<1x256xi32>
    %54 = arith.andi %49, %53 : vector<1x256xi1>
    %c0_32 = arith.constant 0 : index
    %c111 = arith.constant 111 : index
    %55 = vector.load %arg7[%c0_32, %c111] : memref<32x512xf32, #tpu.memory_space<vmem>>, vector<16x256xf32>
    %cst_33 = arith.constant 0.000000e+00 : f32
    %56 = vector.broadcast %cst_33 : f32 to vector<16x256xf32>
    %57 = vector.shape_cast %45 : vector<1x256xi1> to vector<1x256xi1>
    %58 = vector.broadcast %57 : vector<1x256xi1> to vector<16x256xi1>
    %59 = arith.select %58, %55, %56 : vector<16x256xi1>, vector<16x256xf32>
    %c0_34 = arith.constant 0 : index
    %c0_35 = arith.constant 0 : index
    %60 = vector.load %arg8[%c0_34, %c0_35] : memref<152x512xf32, #tpu.memory_space<vmem>>, vector<16x256xf32>
    tpu.vector_store %arg8[%c0_34, %c0_35], %59 {strides = array<i32>} : memref<152x512xf32, #tpu.memory_space<vmem>>, vector<16x256xf32>,
    %c0_36 = arith.constant 0 : index
    %c112 = arith.constant 112 : index
    %61 = vector.load %arg7[%c0_36, %c112] : memref<32x512xf32, #tpu.memory_space<vmem>>, vector<16x256xf32>
    %c16_37 = arith.constant 16 : index
    %c0_38 = arith.constant 0 : index
    %62 = vector.load %arg8[%c16_37, %c0_38] : memref<152x512xf32, #tpu.memory_space<vmem>>, vector<16x256xf32>
    tpu.vector_store %arg8[%c16_37, %c0_38], %61 {strides = array<i32>} : memref<152x512xf32, #tpu.memory_space<vmem>>, vector<16x256xf32>,
    %c0_39 = arith.constant 0 : index
    %c113 = arith.constant 113 : index
    %63 = vector.load %arg7[%c0_39, %c113] : memref<32x512xf32, #tpu.memory_space<vmem>>, vector<16x256xf32>
    %cst_40 = arith.constant 0.000000e+00 : f32
    %64 = vector.broadcast %cst_40 : f32 to vector<16x256xf32>
    %65 = vector.shape_cast %54 : vector<1x256xi1> to vector<1x256xi1>
    %66 = vector.broadcast %65 : vector<1x256xi1> to vector<16x256xi1>
    %67 = arith.select %66, %63, %64 : vector<16x256xi1>, vector<16x256xf32>
    %c32 = arith.constant 32 : index
    %c0_41 = arith.constant 0 : index
    %68 = vector.load %arg8[%c32, %c0_41] : memref<152x512xf32, #tpu.memory_space<vmem>>, vector<16x256xf32>
    tpu.vector_store %arg8[%c32, %c0_41], %67 {strides = array<i32>} : memref<152x512xf32, #tpu.memory_space<vmem>>, vector<16x256xf32>,
    %c0_42 = arith.constant 0 : index
    %c127 = arith.constant 127 : index
    %69 = vector.load %arg7[%c0_42, %c127] : memref<32x512xf32, #tpu.memory_space<vmem>>, vector<16x256xf32>
    %cst_43 = arith.constant 0.000000e+00 : f32
    %70 = vector.broadcast %cst_43 : f32 to vector<16x256xf32>
    %71 = vector.shape_cast %45 : vector<1x256xi1> to vector<1x256xi1>
    %72 = vector.broadcast %71 : vector<1x256xi1> to vector<16x256xi1>
    %73 = arith.select %72, %69, %70 : vector<16x256xi1>, vector<16x256xf32>
    %c48 = arith.constant 48 : index
    %c0_44 = arith.constant 0 : index
    %74 = vector.load %arg8[%c48, %c0_44] : memref<152x512xf32, #tpu.memory_space<vmem>>, vector<16x256xf32>
    tpu.vector_store %arg8[%c48, %c0_44], %73 {strides = array<i32>} : memref<152x512xf32, #tpu.memory_space<vmem>>, vector<16x256xf32>,
    %c0_45 = arith.constant 0 : index
    %c128_46 = arith.constant 128 : index
    %75 = vector.load %arg7[%c0_45, %c128_46] : memref<32x512xf32, #tpu.memory_space<vmem>>, vector<16x256xf32>
    %c64 = arith.constant 64 : index
    %c0_47 = arith.constant 0 : index
    %76 = vector.load %arg8[%c64, %c0_47] : memref<152x512xf32, #tpu.memory_space<vmem>>, vector<16x256xf32>
    tpu.vector_store %arg8[%c64, %c0_47], %75 {strides = array<i32>} : memref<152x512xf32, #tpu.memory_space<vmem>>, vector<16x256xf32>,
    %c0_48 = arith.constant 0 : index
    %c129 = arith.constant 129 : index
    %77 = vector.load %arg7[%c0_48, %c129] : memref<32x512xf32, #tpu.memory_space<vmem>>, vector<16x256xf32>
    %cst_49 = arith.constant 0.000000e+00 : f32
    %78 = vector.broadcast %cst_49 : f32 to vector<16x256xf32>
    %79 = vector.shape_cast %54 : vector<1x256xi1> to vector<1x256xi1>
    %80 = vector.broadcast %79 : vector<1x256xi1> to vector<16x256xi1>
    %81 = arith.select %80, %77, %78 : vector<16x256xi1>, vector<16x256xf32>
    %c80 = arith.constant 80 : index
    %c0_50 = arith.constant 0 : index
    %82 = vector.load %arg8[%c80, %c0_50] : memref<152x512xf32, #tpu.memory_space<vmem>>, vector<16x256xf32>
    tpu.vector_store %arg8[%c80, %c0_50], %81 {strides = array<i32>} : memref<152x512xf32, #tpu.memory_space<vmem>>, vector<16x256xf32>,
    %c0_51 = arith.constant 0 : index
    %c143 = arith.constant 143 : index
    %83 = vector.load %arg7[%c0_51, %c143] : memref<32x512xf32, #tpu.memory_space<vmem>>, vector<16x256xf32>
    %cst_52 = arith.constant 0.000000e+00 : f32
    %84 = vector.broadcast %cst_52 : f32 to vector<16x256xf32>
    %85 = vector.shape_cast %45 : vector<1x256xi1> to vector<1x256xi1>
    %86 = vector.broadcast %85 : vector<1x256xi1> to vector<16x256xi1>
    %87 = arith.select %86, %83, %84 : vector<16x256xi1>, vector<16x256xf32>
    %c96 = arith.constant 96 : index
    %c0_53 = arith.constant 0 : index
    %88 = vector.load %arg8[%c96, %c0_53] : memref<152x512xf32, #tpu.memory_space<vmem>>, vector<16x256xf32>
    tpu.vector_store %arg8[%c96, %c0_53], %87 {strides = array<i32>} : memref<152x512xf32, #tpu.memory_space<vmem>>, vector<16x256xf32>,
    %c0_54 = arith.constant 0 : index
    %c144 = arith.constant 144 : index
    %89 = vector.load %arg7[%c0_54, %c144] : memref<32x512xf32, #tpu.memory_space<vmem>>, vector<16x256xf32>
    %c112_55 = arith.constant 112 : index
    %c0_56 = arith.constant 0 : index
    %90 = vector.load %arg8[%c112_55, %c0_56] : memref<152x512xf32, #tpu.memory_space<vmem>>, vector<16x256xf32>
    tpu.vector_store %arg8[%c112_55, %c0_56], %89 {strides = array<i32>} : memref<152x512xf32, #tpu.memory_space<vmem>>, vector<16x256xf32>,
    %c0_57 = arith.constant 0 : index
    %c145 = arith.constant 145 : index
    %91 = vector.load %arg7[%c0_57, %c145] : memref<32x512xf32, #tpu.memory_space<vmem>>, vector<16x256xf32>
    %cst_58 = arith.constant 0.000000e+00 : f32
    %92 = vector.broadcast %cst_58 : f32 to vector<16x256xf32>
    %93 = vector.shape_cast %54 : vector<1x256xi1> to vector<1x256xi1>
    %94 = vector.broadcast %93 : vector<1x256xi1> to vector<16x256xi1>
    %95 = arith.select %94, %91, %92 : vector<16x256xi1>, vector<16x256xf32>
    %c128_59 = arith.constant 128 : index
    %c0_60 = arith.constant 0 : index
    %96 = vector.load %arg8[%c128_59, %c0_60] : memref<152x512xf32, #tpu.memory_space<vmem>>, vector<16x256xf32>
    tpu.vector_store %arg8[%c128_59, %c0_60], %95 {strides = array<i32>} : memref<152x512xf32, #tpu.memory_space<vmem>>, vector<16x256xf32>,
    %c16_61 = arith.constant 16 : index
    %c111_62 = arith.constant 111 : index
    %97 = vector.load %arg7[%c16_61, %c111_62] : memref<32x512xf32, #tpu.memory_space<vmem>>, vector<16x256xf32>
    %cst_63 = arith.constant 0.000000e+00 : f32
    %98 = vector.broadcast %cst_63 : f32 to vector<16x256xf32>
    %99 = vector.shape_cast %45 : vector<1x256xi1> to vector<1x256xi1>
    %100 = vector.broadcast %99 : vector<1x256xi1> to vector<16x256xi1>
    %101 = arith.select %100, %97, %98 : vector<16x256xi1>, vector<16x256xf32>
    %c0_64 = arith.constant 0 : index
    %c256 = arith.constant 256 : index
    %102 = vector.load %arg8[%c0_64, %c256] : memref<152x512xf32, #tpu.memory_space<vmem>>, vector<16x256xf32>
    tpu.vector_store %arg8[%c0_64, %c256], %101 {strides = array<i32>} : memref<152x512xf32, #tpu.memory_space<vmem>>, vector<16x256xf32>,
    %c16_65 = arith.constant 16 : index
    %c112_66 = arith.constant 112 : index
    %103 = vector.load %arg7[%c16_65, %c112_66] : memref<32x512xf32, #tpu.memory_space<vmem>>, vector<16x256xf32>
    %c16_67 = arith.constant 16 : index
    %c256_68 = arith.constant 256 : index
    %104 = vector.load %arg8[%c16_67, %c256_68] : memref<152x512xf32, #tpu.memory_space<vmem>>, vector<16x256xf32>
    tpu.vector_store %arg8[%c16_67, %c256_68], %103 {strides = array<i32>} : memref<152x512xf32, #tpu.memory_space<vmem>>, vector<16x256xf32>,
    %c16_69 = arith.constant 16 : index
    %c113_70 = arith.constant 113 : index
    %105 = vector.load %arg7[%c16_69, %c113_70] : memref<32x512xf32, #tpu.memory_space<vmem>>, vector<16x256xf32>
    %cst_71 = arith.constant 0.000000e+00 : f32
    %106 = vector.broadcast %cst_71 : f32 to vector<16x256xf32>
    %107 = vector.shape_cast %54 : vector<1x256xi1> to vector<1x256xi1>
    %108 = vector.broadcast %107 : vector<1x256xi1> to vector<16x256xi1>
    %109 = arith.select %108, %105, %106 : vector<16x256xi1>, vector<16x256xf32>
    %c32_72 = arith.constant 32 : index
    %c256_73 = arith.constant 256 : index
    %110 = vector.load %arg8[%c32_72, %c256_73] : memref<152x512xf32, #tpu.memory_space<vmem>>, vector<16x256xf32>
    tpu.vector_store %arg8[%c32_72, %c256_73], %109 {strides = array<i32>} : memref<152x512xf32, #tpu.memory_space<vmem>>, vector<16x256xf32>,
    %c16_74 = arith.constant 16 : index
    %c127_75 = arith.constant 127 : index
    %111 = vector.load %arg7[%c16_74, %c127_75] : memref<32x512xf32, #tpu.memory_space<vmem>>, vector<16x256xf32>
    %cst_76 = arith.constant 0.000000e+00 : f32
    %112 = vector.broadcast %cst_76 : f32 to vector<16x256xf32>
    %113 = vector.shape_cast %45 : vector<1x256xi1> to vector<1x256xi1>
    %114 = vector.broadcast %113 : vector<1x256xi1> to vector<16x256xi1>
    %115 = arith.select %114, %111, %112 : vector<16x256xi1>, vector<16x256xf32>
    %c48_77 = arith.constant 48 : index
    %c256_78 = arith.constant 256 : index
    %116 = vector.load %arg8[%c48_77, %c256_78] : memref<152x512xf32, #tpu.memory_space<vmem>>, vector<16x256xf32>
    tpu.vector_store %arg8[%c48_77, %c256_78], %115 {strides = array<i32>} : memref<152x512xf32, #tpu.memory_space<vmem>>, vector<16x256xf32>,
    %c16_79 = arith.constant 16 : index
    %c128_80 = arith.constant 128 : index
    %117 = vector.load %arg7[%c16_79, %c128_80] : memref<32x512xf32, #tpu.memory_space<vmem>>, vector<16x256xf32>
    %c64_81 = arith.constant 64 : index
    %c256_82 = arith.constant 256 : index
    %118 = vector.load %arg8[%c64_81, %c256_82] : memref<152x512xf32, #tpu.memory_space<vmem>>, vector<16x256xf32>
    tpu.vector_store %arg8[%c64_81, %c256_82], %117 {strides = array<i32>} : memref<152x512xf32, #tpu.memory_space<vmem>>, vector<16x256xf32>,
    %c16_83 = arith.constant 16 : index
    %c129_84 = arith.constant 129 : index
    %119 = vector.load %arg7[%c16_83, %c129_84] : memref<32x512xf32, #tpu.memory_space<vmem>>, vector<16x256xf32>
    %cst_85 = arith.constant 0.000000e+00 : f32
    %120 = vector.broadcast %cst_85 : f32 to vector<16x256xf32>
    %121 = vector.shape_cast %54 : vector<1x256xi1> to vector<1x256xi1>
    %122 = vector.broadcast %121 : vector<1x256xi1> to vector<16x256xi1>
    %123 = arith.select %122, %119, %120 : vector<16x256xi1>, vector<16x256xf32>
    %c80_86 = arith.constant 80 : index
    %c256_87 = arith.constant 256 : index
    %124 = vector.load %arg8[%c80_86, %c256_87] : memref<152x512xf32, #tpu.memory_space<vmem>>, vector<16x256xf32>
    tpu.vector_store %arg8[%c80_86, %c256_87], %123 {strides = array<i32>} : memref<152x512xf32, #tpu.memory_space<vmem>>, vector<16x256xf32>,
    %c16_88 = arith.constant 16 : index
    %c143_89 = arith.constant 143 : index
    %125 = vector.load %arg7[%c16_88, %c143_89] : memref<32x512xf32, #tpu.memory_space<vmem>>, vector<16x256xf32>
    %cst_90 = arith.constant 0.000000e+00 : f32
    %126 = vector.broadcast %cst_90 : f32 to vector<16x256xf32>
    %127 = vector.shape_cast %45 : vector<1x256xi1> to vector<1x256xi1>
    %128 = vector.broadcast %127 : vector<1x256xi1> to vector<16x256xi1>
    %129 = arith.select %128, %125, %126 : vector<16x256xi1>, vector<16x256xf32>
    %c96_91 = arith.constant 96 : index
    %c256_92 = arith.constant 256 : index
    %130 = vector.load %arg8[%c96_91, %c256_92] : memref<152x512xf32, #tpu.memory_space<vmem>>, vector<16x256xf32>
    tpu.vector_store %arg8[%c96_91, %c256_92], %129 {strides = array<i32>} : memref<152x512xf32, #tpu.memory_space<vmem>>, vector<16x256xf32>,
    %c16_93 = arith.constant 16 : index
    %c144_94 = arith.constant 144 : index
    %131 = vector.load %arg7[%c16_93, %c144_94] : memref<32x512xf32, #tpu.memory_space<vmem>>, vector<16x256xf32>
    %c112_95 = arith.constant 112 : index
    %c256_96 = arith.constant 256 : index
    %132 = vector.load %arg8[%c112_95, %c256_96] : memref<152x512xf32, #tpu.memory_space<vmem>>, vector<16x256xf32>
    tpu.vector_store %arg8[%c112_95, %c256_96], %131 {strides = array<i32>} : memref<152x512xf32, #tpu.memory_space<vmem>>, vector<16x256xf32>,
    %c16_97 = arith.constant 16 : index
    %c145_98 = arith.constant 145 : index
    %133 = vector.load %arg7[%c16_97, %c145_98] : memref<32x512xf32, #tpu.memory_space<vmem>>, vector<16x256xf32>
    %cst_99 = arith.constant 0.000000e+00 : f32
    %134 = vector.broadcast %cst_99 : f32 to vector<16x256xf32>
    %135 = vector.shape_cast %54 : vector<1x256xi1> to vector<1x256xi1>
    %136 = vector.broadcast %135 : vector<1x256xi1> to vector<16x256xi1>
    %137 = arith.select %136, %133, %134 : vector<16x256xi1>, vector<16x256xf32>
    %c128_100 = arith.constant 128 : index
    %c256_101 = arith.constant 256 : index
    %138 = vector.load %arg8[%c128_100, %c256_101] : memref<152x512xf32, #tpu.memory_space<vmem>>, vector<16x256xf32>
    tpu.vector_store %arg8[%c128_100, %c256_101], %137 {strides = array<i32>} : memref<152x512xf32, #tpu.memory_space<vmem>>, vector<16x256xf32>,
    %139 = tpu.iota {dimensions = array<i32: 0>} : vector<8x512xi32>
    %c0_i32_102 = arith.constant 0 : i32
    %140 = vector.broadcast %c0_i32_102 : i32 to vector<8x512xi32>
    %141 = arith.cmpi eq, %139, %140 : vector<8x512xi32>
    %142 = arith.extui %141 : vector<8x512xi1> to vector<8x512xi32>
    %143 = arith.sitofp %142 : vector<8x512xi32> to vector<8x512xf32>
    %c144_103 = arith.constant 144 : index
    %c0_104 = arith.constant 0 : index
    %144 = vector.load %arg8[%c144_103, %c0_104] : memref<152x512xf32, #tpu.memory_space<vmem>>, vector<8x512xf32>
    tpu.vector_store %arg8[%c144_103, %c0_104], %143 {strides = array<i32>} : memref<152x512xf32, #tpu.memory_space<vmem>>, vector<8x512xf32>,
    %c0_105 = arith.constant 0 : index
    %c0_106 = arith.constant 0 : index
    %145 = vector.load %arg4[%c0_105, %c0_106] : memref<32x152xf32, #tpu.memory_space<vmem>>, vector<32x152xf32>
    %c0_107 = arith.constant 0 : index
    %c0_108 = arith.constant 0 : index
    %146 = vector.load %arg8[%c0_107, %c0_108] : memref<152x512xf32, #tpu.memory_space<vmem>>, vector<152x512xf32>
    %cst_109 = arith.constant dense<0.000000e+00> : vector<32x512xf32>
    %147 = tpu.matmul %145, %146, %cst_109 {dimension_numbers = #tpu.dot_dimension_numbers<[1], [0], [0], [1], [0, 0, 1, 1], [], []>} : vector<32x152xf32>, vector<152x512xf32>, vector<32x512xf32> -> vector<32x512xf32>
    %148 = vector.extract_strided_slice %147 {offsets = [0, 0], sizes = [8, 512], strides = [1, 1]} : vector<32x512xf32> to vector<8x512xf32>
    %149 = arith.negf %148 : vector<8x512xf32>
    %150 = math.exp %149 : vector<8x512xf32>
    %cst_110 = arith.constant 1.000000e+00 : f32
    %151 = vector.broadcast %cst_110 : f32 to vector<8x512xf32>
    %152 = arith.addf %151, %150 : vector<8x512xf32>
    %153 = arith.divf %151, %152 : vector<8x512xf32>
    %154 = vector.extract_strided_slice %147 {offsets = [8, 0], sizes = [8, 512], strides = [1, 1]} : vector<32x512xf32> to vector<8x512xf32>
    %155 = arith.negf %154 : vector<8x512xf32>
    %156 = math.exp %155 : vector<8x512xf32>
    %cst_111 = arith.constant 1.000000e+00 : f32
    %157 = vector.broadcast %cst_111 : f32 to vector<8x512xf32>
    %158 = arith.addf %157, %156 : vector<8x512xf32>
    %159 = arith.divf %157, %158 : vector<8x512xf32>
    %160 = vector.extract_strided_slice %147 {offsets = [16, 0], sizes = [8, 512], strides = [1, 1]} : vector<32x512xf32> to vector<8x512xf32>
    %161 = arith.negf %160 : vector<8x512xf32>
    %162 = math.exp %161 : vector<8x512xf32>
    %cst_112 = arith.constant 1.000000e+00 : f32
    %163 = vector.broadcast %cst_112 : f32 to vector<8x512xf32>
    %164 = arith.addf %163, %162 : vector<8x512xf32>
    %165 = arith.divf %163, %164 : vector<8x512xf32>
    %166 = vector.extract_strided_slice %147 {offsets = [24, 0], sizes = [8, 512], strides = [1, 1]} : vector<32x512xf32> to vector<8x512xf32>
    %167 = math.tanh %166 : vector<8x512xf32>
    %168 = vector.extract_strided_slice %159 {offsets = [0, 0], sizes = [8, 256], strides = [1, 1]} : vector<8x512xf32> to vector<8x256xf32>
    %c0_113 = arith.constant 0 : index
    %c0_114 = arith.constant 0 : index
    %c0_115 = arith.constant 0 : index
    %169 = vector.load %arg3[%c0_113, %c0_114, %c0_115] : memref<2x8x256xf32, #tpu.memory_space<vmem>>, vector<1x8x256xf32>
    %170 = vector.shape_cast %169 : vector<1x8x256xf32> to vector<8x256xf32>
    %171 = arith.mulf %168, %170 : vector<8x256xf32>
    %172 = vector.extract_strided_slice %153 {offsets = [0, 0], sizes = [8, 256], strides = [1, 1]} : vector<8x512xf32> to vector<8x256xf32>
    %173 = vector.extract_strided_slice %167 {offsets = [0, 0], sizes = [8, 256], strides = [1, 1]} : vector<8x512xf32> to vector<8x256xf32>
    %174 = arith.mulf %172, %173 : vector<8x256xf32>
    %175 = arith.addf %171, %174 : vector<8x256xf32>
    %176 = vector.extract_strided_slice %165 {offsets = [0, 0], sizes = [8, 256], strides = [1, 1]} : vector<8x512xf32> to vector<8x256xf32>
    %177 = math.tanh %175 : vector<8x256xf32>
    %178 = arith.mulf %176, %177 : vector<8x256xf32>
    %c0_116 = arith.constant 0 : index
    %c0_117 = arith.constant 0 : index
    %c0_118 = arith.constant 0 : index
    %179 = vector.load %arg6[%c0_116, %c0_117, %c0_118] : memref<2x8x256xf32, #tpu.memory_space<vmem>>, vector<1x8x256xf32>
    %180 = vector.shape_cast %179 : vector<1x8x256xf32> to vector<8x256xf32>
    %181 = vector.shape_cast %175 : vector<8x256xf32> to vector<1x8x256xf32>
    tpu.vector_store %arg6[%c0_116, %c0_117, %c0_118], %181 {strides = array<i32>} : memref<2x8x256xf32, #tpu.memory_space<vmem>>, vector<1x8x256xf32>,
    %c0_119 = arith.constant 0 : index
    %c0_120 = arith.constant 0 : index
    %c0_121 = arith.constant 0 : index
    %182 = vector.load %arg5[%c0_119, %c0_120, %c0_121] : memref<2x8x256xf32, #tpu.memory_space<vmem>>, vector<1x8x256xf32>
    %183 = vector.shape_cast %182 : vector<1x8x256xf32> to vector<8x256xf32>
    %184 = vector.shape_cast %178 : vector<8x256xf32> to vector<1x8x256xf32>
    tpu.vector_store %arg5[%c0_119, %c0_120, %c0_121], %184 {strides = array<i32>} : memref<2x8x256xf32, #tpu.memory_space<vmem>>, vector<1x8x256xf32>,
    %185 = vector.extract_strided_slice %159 {offsets = [0, 256], sizes = [8, 256], strides = [1, 1]} : vector<8x512xf32> to vector<8x256xf32>
    %c1_122 = arith.constant 1 : index
    %c0_123 = arith.constant 0 : index
    %c0_124 = arith.constant 0 : index
    %186 = vector.load %arg3[%c1_122, %c0_123, %c0_124] : memref<2x8x256xf32, #tpu.memory_space<vmem>>, vector<1x8x256xf32>
    %187 = vector.shape_cast %186 : vector<1x8x256xf32> to vector<8x256xf32>
    %188 = arith.mulf %185, %187 : vector<8x256xf32>
    %189 = vector.extract_strided_slice %153 {offsets = [0, 256], sizes = [8, 256], strides = [1, 1]} : vector<8x512xf32> to vector<8x256xf32>
    %190 = vector.extract_strided_slice %167 {offsets = [0, 256], sizes = [8, 256], strides = [1, 1]} : vector<8x512xf32> to vector<8x256xf32>
    %191 = arith.mulf %189, %190 : vector<8x256xf32>
    %192 = arith.addf %188, %191 : vector<8x256xf32>
    %193 = vector.extract_strided_slice %165 {offsets = [0, 256], sizes = [8, 256], strides = [1, 1]} : vector<8x512xf32> to vector<8x256xf32>
    %194 = math.tanh %192 : vector<8x256xf32>
    %195 = arith.mulf %193, %194 : vector<8x256xf32>
    %c1_125 = arith.constant 1 : index
    %c0_126 = arith.constant 0 : index
    %c0_127 = arith.constant 0 : index
    %196 = vector.load %arg6[%c1_125, %c0_126, %c0_127] : memref<2x8x256xf32, #tpu.memory_space<vmem>>, vector<1x8x256xf32>
    %197 = vector.shape_cast %196 : vector<1x8x256xf32> to vector<8x256xf32>
    %198 = vector.shape_cast %192 : vector<8x256xf32> to vector<1x8x256xf32>
    tpu.vector_store %arg6[%c1_125, %c0_126, %c0_127], %198 {strides = array<i32>} : memref<2x8x256xf32, #tpu.memory_space<vmem>>, vector<1x8x256xf32>,
    %c1_128 = arith.constant 1 : index
    %c0_129 = arith.constant 0 : index
    %c0_130 = arith.constant 0 : index
    %199 = vector.load %arg5[%c1_128, %c0_129, %c0_130] : memref<2x8x256xf32, #tpu.memory_space<vmem>>, vector<1x8x256xf32>
    %200 = vector.shape_cast %199 : vector<1x8x256xf32> to vector<8x256xf32>
    %201 = vector.shape_cast %195 : vector<8x256xf32> to vector<1x8x256xf32>
    tpu.vector_store %arg5[%c1_128, %c0_129, %c0_130], %201 {strides = array<i32>} : memref<2x8x256xf32, #tpu.memory_space<vmem>>, vector<1x8x256xf32>,
    return
  }
  func.func @transform_0(%arg0: i32) -> (i32, i32, i32) {
    %c0_i32 = arith.constant 0 : i32
    %c0_i32_0 = arith.constant 0 : i32
    %c0_i32_1 = arith.constant 0 : i32
    return %arg0, %c0_i32, %c0_i32_0 : i32, i32, i32
  }
  func.func @transform_1(%arg0: i32) -> (i32, i32, i32) {
    %c0_i32 = arith.constant 0 : i32
    %c0_i32_0 = arith.constant 0 : i32
    %c0_i32_1 = arith.constant 0 : i32
    return %arg0, %c0_i32, %c0_i32_0 : i32, i32, i32
  }
  func.func @transform_2(%arg0: i32) -> (i32, i32, i32) {
    %c0_i32 = arith.constant 0 : i32
    %c0_i32_0 = arith.constant 0 : i32
    %c0_i32_1 = arith.constant 0 : i32
    return %arg0, %c0_i32, %c0_i32_0 : i32, i32, i32
  }
  func.func @transform_3(%arg0: i32) -> (i32, i32) {
    %c0_i32 = arith.constant 0 : i32
    %c0_i32_0 = arith.constant 0 : i32
    %c0_i32_1 = arith.constant 0 : i32
    return %c0_i32, %c0_i32_0 : i32, i32
  }
  func.func @transform_4(%arg0: i32) -> (i32, i32, i32) {
    %c0_i32 = arith.constant 0 : i32
    %c0_i32_0 = arith.constant 0 : i32
    %c0_i32_1 = arith.constant 0 : i32
    return %arg0, %c0_i32, %c0_i32_0 : i32, i32, i32
  }
  func.func @transform_5(%arg0: i32) -> (i32, i32, i32) {
    %c0_i32 = arith.constant 0 : i32
    %c0_i32_0 = arith.constant 0 : i32
    %c0_i32_1 = arith.constant 0 : i32
    return %arg0, %c0_i32, %c0_i32_0 : i32, i32, i32
  }
}

</mosaic_0001>

<bundles_post_ra>
// kernel: conv_lstm_cell_packed.1
= control target key start
LH: loop header
LB: loop body
LE: loop exit
PB: predicated region body
PF: predicated region fallthrough
CT: control target
= control target key end

     0   :  { %s1674_s20 = smov 113   ;;  %v1675_v2 = vmov 0.0   ;;  %s1676_s21 = smov 112   ;;  %v59_v27 = vlaneseq  ;;  %vm384_vm0 = vcmask 916480   ;;  %vm343_vm2 = vcmask 924672   ;;  %s2498_s1 = inlined_call_operand.vmem [shape: f32[2,8,256], index: 1, kind: input, shape index: {}]   ;;  %s2499_s0 = inlined_call_operand.vmem [shape: f32[2,4,256], index: 0, kind: input, shape index: {}]   ;;  %s2500_s3 = inlined_call_operand.vmem [shape: f32[32,152], index: 3, kind: input, shape index: {}]   ;;  %s2501_s2 = inlined_call_operand.vmem [shape: f32[2,8,256], index: 2, kind: input, shape index: {}]   ;;  %s2502_s5 = inlined_call_operand.vmem [shape: f32[2,8,256], index: 5, kind: output, shape index: {1}]   ;;  %s2503_s4 = inlined_call_operand.vmem [shape: f32[2,8,256], index: 4, kind: output, shape index: {0}]  }
   0x1   :  { %v1717_v0 = vld [vmem:[%s2498_s1 + $0x8] sm:$0xff]  ;;  %1491 = vrot.lane.b32.xlu1 %v1675_v2, %s1674_s20  ;;  %40 = vst [vmem:[#allocation2 + $0x40] sm:$0xf0] %v1675_v2  ;;  %s1677_s22 = smov 127   ;;  %v31_v3 = vld [vmem:[%s2499_s0] sm:$0xff]  ;;  %s1679_s29 = smov 15  }
   0x2   :  { %333 = vrot.lane.b32.xlu2 %v1717_v0, %s1674_s20  ;;  %v1500_v1 = vpack.i.bf16 0.0, %v1717_v0  ;;  %41 = vst [vmem:[#allocation2 + $0x78] sm:$0xf0] %v1675_v2  ;;  %v1739_v4 = vld [vmem:[%s2498_s1] sm:$0xff]  ;;  %v1373_v5 = vld [vmem:[%s2499_s0 + $0x8] sm:$0xff]  ;;  %s1678_s0 = smov 1  }
   0x3   :  { %57 = vst [vmem:[#allocation2 + $0x70] sm:$0xf0] %v1675_v2  ;;  %s1680_s30 = smov 16   ;;  %s1681_s6 = smov 111   ;;  %v1530_v13 = vpack.i.bf16 %v1717_v0, %v1739_v4  ;;  %v1791_v14 = vld [vmem:[%s2498_s1 + $0x10] sm:$0xff]  ;;  %v1796_v15 = vld [vmem:[%s2498_s1 + $0x18] sm:$0xff] }
   0x4   :  { %1501 = vrot.lane.b32.xlu0 %v1500_v1, %s1676_s21  ;;  %58 = vst [vmem:[#allocation2 + $0x38] sm:$0xf0] %v1675_v2  ;;  %s1682_s11 = smov 17   ;;  %v1555_v19 = vpack.i.bf16 %v1796_v15, %v1791_v14  ;;  %v60_v29 = vand.u32 127, %v59_v27  ;;  %vm302_vm4 = vcmask 1039360   ;;  %vm253_vm7 = vcmask 7168  }
   0x5   :  { %33 = vst [vmem:[#allocation1] ss:$2 sm:$0xff] %v31_v3  ;;  %vm212_vm9 = vcmask 121856   ;;  %vm171_vm10 = vcmask 130048   ;;  %vm130_vm11 = vcmask 138240   ;;  %vm421_vm12 = vcmask 908288  }
   0x6   :  { %v61_v32 = vadd.s32 128, %v60_v29  ;;  %v66_v53 = vand.u32 15, %v60_v29  ;;  %vm851_vm13 = vcmask 195584  }
   0x8   :  { %v73_v33 = vand.u32 15, %v61_v32  ;;  %v1894_v60 = vadd.s32 4294967295, %v66_v53  ;;  %v1907_v63 = vadd.s32 1, %v66_v53 }
   0x9   :  { %1496 = vrot.lane.b32.xlu1 %v1675_v2, %s1677_s22 }
   0xa   :  { %292 = vrot.lane.b32.xlu2 %v1717_v0, %s1677_s22  ;;  %v1868_v43 = vadd.s32 4294967295, %v73_v33  ;;  %v1875_v50 = vadd.s32 1, %v73_v33  ;;  %vm88_vm5 = vcmp.ge.s32.totalorder %v1894_v60, 0  ;;  %vm98_vm6 = vcmp.lt.s32.totalorder %v1907_v63, 16 }
   0xc   :  { %v35_v6 = vld.sshfl [vmem:[#allocation1 + $0x8] sm:$0xff pattern:$0x75316420]  ;;  %v34_v7 = vld.sshfl [vmem:[#allocation1] sm:$0xff pattern:$0x75316420] }
   0xd   :  { %39 = vst [vmem:[#allocation2 + $0x78] sm:$0xf] %v35_v6  ;;  %vm89_vm1 = vcmp.ge.s32.totalorder %v1868_v43, 0  ;;  %vm99_vm3 = vcmp.lt.s32.totalorder %v1875_v50, 16 }
   0xe   :  { %38 = vst [vmem:[#allocation2 + $0x40] sm:$0xf] %v34_v7 }
   0xf   :  { %50 = vst [vmem:[#allocation1] ss:$2 sm:$0xff] %v1373_v5 }
  0x14   :  { %v1744_v8 = vld [vmem:[#allocation2 + $0x78] sm:$0xff] }
  0x15   :  { %v1505_v9 = vpack.i.bf16 0.0, %v1744_v8  ;;  %339 = vrot.lane.b32.xlu1 %v1744_v8, %s1674_s20  ;;  %v1749_v10 = vld [vmem:[#allocation2 + $0x40] sm:$0xff] }
  0x16   :  { %v1510_v11 = vpack.i.bf16 %v1739_v4, %v1749_v10  ;;  %v1520_v12 = vpack.i.bf16 %v1744_v8, %v1749_v10  ;;  %v51_v16 = vld.sshfl [vmem:[#allocation1] sm:$0xff pattern:$0x75316420]  ;;  %v52_v17 = vld.sshfl [vmem:[#allocation1 + $0x8] sm:$0xff pattern:$0x75316420] }
  0x17   :  { %1506 = vrot.lane.b32.xlu0 %v1505_v9, %s1676_s21  ;;  %55 = vst [vmem:[#allocation2 + $0x70] sm:$0xf] %v51_v16  ;;  %v1683_v16 = vmov 1.0  }
  0x18   :  { %1511 = vrot.lane.b32.xlu2 %v1510_v11, %s1676_s21  ;;  %56 = vst [vmem:[#allocation2 + $0x38] sm:$0xf] %v52_v17  ;;  %v1939_v11 = vshrl.u32 %v59_v27, 7 }
  0x1a   :  { %vm760_vm8 = vcmp.eq.s32.totalorder %v1939_v11, 0 }
  0x1b   :  { %1432 = vmatpush.msk.msra.mxu3 %vm760_vm8, %v1683_v16  ;;  %1419 = vmatpush.msk.msra.mxu1 %vm760_vm8, %v1683_v16 }
  0x1d   :  { %331 = vrot.lane.b32.xlu1 %v1739_v4, %s1674_s20 }
  0x1e   :  { %v1828_v20 = vld [vmem:[#allocation2 + $0x70] sm:$0xff] }
  0x1f   :  { %298 = vrot.lane.b32.xlu0 %v1744_v8, %s1677_s22  ;;  %v1830_v21 = vld [vmem:[#allocation2 + $0x38] sm:$0xff] }
  0x20   :  { %296 = vrot.lane.b32.xlu2 %v1749_v10, %s1677_s22  ;;  %v1550_v23 = vpack.i.bf16 %v1830_v21, %v1828_v20 }
  0x25   :  { %251 = vrot.lane.b32.xlu1 %v1744_v8, %s1678_s0 }
  0x27   :  { %337 = vrot.lane.b32.xlu0 %v1749_v10, %s1674_s20 }
  0x28   :  { %290 = vrot.lane.b32.xlu2 %v1739_v4, %s1677_s22 }
  0x2d   :  { %245 = vrot.lane.b32.xlu1 %v1717_v0, %s1678_s0 }
  0x2f   :  { %249 = vrot.lane.b32.xlu0 %v1749_v10, %s1678_s0 }
  0x30   :  { %208 = vrot.lane.b32.xlu2 %v1749_v10, %s1679_s29 }
  0x35   :  { %202 = vrot.lane.b32.xlu1 %v1739_v4, %s1679_s29 }
  0x37   :  { %243 = vrot.lane.b32.xlu0 %v1739_v4, %s1678_s0 }
  0x38   :  { %204 = vrot.lane.b32.xlu2 %v1717_v0, %s1679_s29 }
  0x3d   :  { %1521 = vrot.lane.b32.xlu1 %v1520_v12, %s1680_s30 }
  0x3f   :  { %210 = vrot.lane.b32.xlu0 %v1744_v8, %s1679_s29 }
  0x40   :  { %417 = vrot.lane.b32.xlu2 %v1744_v8, %s1681_s6 }
  0x45   :  { %1531 = vrot.lane.b32.xlu1 %v1530_v13, %s1680_s30 }
  0x47   :  { %1516 = vrot.lane.b32.xlu0 %v1675_v2, %s1678_s0 }
  0x48   :  { %1536 = vrot.lane.b32.xlu2 %v1675_v2, %s1679_s29 }
  0x4d   :  { %126 = vrot.lane.b32.xlu1 %v1749_v10, %s1682_s11 }
  0x4f   :  { %1526 = vrot.lane.b32.xlu0 %v1675_v2, %s1681_s6 }
  0x50   :  { %128 = vrot.lane.b32.xlu2 %v1744_v8, %s1682_s11 }
  0x55   :  { %122 = vrot.lane.b32.xlu1 %v1717_v0, %s1682_s11 }
  0x57   :  { %411 = vrot.lane.b32.xlu0 %v1717_v0, %s1681_s6 }
  0x58   :  { %1541 = vrot.lane.b32.xlu2 %v1675_v2, %s1680_s30 }
  0x5c   :  { %v1817_v18 = vpop.permute.xlu2 %333 }
  0x5d   :  { %409 = vrot.lane.b32.xlu1 %v1739_v4, %s1681_s6 }
  0x5f   :  { %120 = vrot.lane.b32.xlu0 %v1739_v4, %s1682_s11 }
  0x60   :  { %1546 = vrot.lane.b32.xlu2 %v1675_v2, %s1682_s11 }
  0x64   :  { %v1832_v22 = vpop.permute.xlu2 %292 }
  0x65   :  { %1556 = vrot.lane.b32.xlu1 %v1555_v19, %s1676_s21  ;;  %v1585_v19 = vpack.i.bf16 %v1828_v20, %v1675_v2 }
  0x67   :  { %415 = vrot.lane.b32.xlu0 %v1749_v10, %s1681_s6 }
  0x68   :  { %1561 = vrot.lane.b32.xlu2 %v1675_v2, %s1676_s21 }
  0x6d   :  { %662 = vrot.lane.b32.xlu1 %v1830_v21, %s1674_s20 }
  0x6f   :  { %1551 = vrot.lane.b32.xlu0 %v1550_v23, %s1676_s21 }
  0x70   :  { %654 = vrot.lane.b32.xlu2 %v1791_v14, %s1674_s20 }
  0x72   :  { %v1512_v24 = vpop.permute.xlu2 %1511 }
  0x73   :  { %v1492_v25 = vpop.permute.xlu1 %1491  ;;  %v1513_v35 = vunpack.i.l.bf16 %v1512_v24  ;;  %v1514_v39 = vunpack.i.h.bf16 %v1512_v24 }
  0x74   :  { %v1494_v46 = vunpack.i.h.bf16 %v1492_v25  ;;  %v1493_v47 = vunpack.i.l.bf16 %v1492_v25 }
  0x75   :  { %1566 = vrot.lane.b32.xlu1 %v1675_v2, %s1674_s20 }
  0x76   :  { %v1502_v30 = vpop.permute.xlu0 %1501  ;;  %v345_v57 = vsel %vm343_vm2, %v1817_v18, %v1494_v46 }
  0x77   :  { %660 = vrot.lane.b32.xlu0 %v1828_v20, %s1674_s20  ;;  %v1504_v36 = vunpack.i.h.bf16 %v1502_v30  ;;  %v1503_v37 = vunpack.i.l.bf16 %v1502_v30 }
  0x78   :  { %620 = vrot.lane.b32.xlu2 %v1828_v20, %s1677_s22 }
  0x79   :  { %v385_v48 = vsel %vm384_vm0, %v1514_v39, %v1503_v37  ;;  %v386_v49 = vsel %vm384_vm0, %v1503_v37, %v1504_v36  ;;  %v1600_v39 = vpack.i.bf16 %v1796_v15, %v1830_v21 }
  0x7a   :  { %v1849_v26 = vpop.permute.xlu2 %296 }
  0x7b   :  { %v1497_v28 = vpop.permute.xlu1 %1496 }
  0x7c   :  { %v1499_v55 = vunpack.i.h.bf16 %v1497_v28  ;;  %v1498_v56 = vunpack.i.l.bf16 %v1497_v28 }
  0x7d   :  { %614 = vrot.lane.b32.xlu1 %v1791_v14, %s1677_s22 }
  0x7e   :  { %v304_v61 = vsel %vm302_vm4, %v1832_v22, %v1499_v55 }
  0x7f   :  { %656 = vrot.lane.b32.xlu0 %v1796_v15, %s1674_s20 }
  0x80   :  { %616 = vrot.lane.b32.xlu2 %v1796_v15, %s1677_s22 }
  0x82   :  { %v1858_v31 = vpop.permute.xlu2 %290 }
  0x85   :  { %1576 = vrot.lane.b32.xlu1 %v1675_v2, %s1678_s0 }
  0x87   :  { %622 = vrot.lane.b32.xlu0 %v1830_v21, %s1677_s22  ;;  %v340_v34 = vpop.permute.xlu1 %339 }
  0x88   :  { %574 = vrot.lane.b32.xlu2 %v1828_v20, %s1678_s0  ;;  %v347_v52 = vsel %vm343_vm2, %v340_v34, %v1493_v47 }
  0x89   :  { %v1507_v38 = vpop.permute.xlu0 %1506 }
  0x8a   :  { %v1509_v40 = vunpack.i.h.bf16 %v1507_v38  ;;  %v1508_v41 = vunpack.i.l.bf16 %v1507_v38  ;;  %v1866_v42 = vpop.permute.xlu2 %208 }
  0x8c   :  { %v387_v44 = vsel %vm384_vm0, %v1513_v35, %v1508_v41  ;;  %v388_v45 = vsel %vm384_vm0, %v1508_v41, %v1509_v40 }
  0x8d   :  { %864 = vmatpush.msra.mxu0 %v387_v44  ;;  %922 = vmatpush.msra.mxu2 %v388_v45 }
  0x8e   :  { %576 = vrot.lane.b32.xlu1 %v1830_v21, %s1678_s0 }
  0x8f   :  { %865 = vmatpush.msra.mxu0 %v385_v48  ;;  %923 = vmatpush.msra.mxu2 %v386_v49  ;;  %v332_v51 = vpop.permute.xlu1 %331 }
  0x90   :  { %1571 = vrot.lane.b32.xlu0 %v1675_v2, %s1677_s22  ;;  %1581 = vrot.lane.b32.xlu2 %v1675_v2, %s1679_s29  ;;  %v344_v6 = vsel %vm343_vm2, %v332_v51, %v1817_v18 }
  0x91   :  { %v299_v54 = vpop.permute.xlu0 %298  ;;  %1422 = vmatpush.msk.msra.mxu2 %vm89_vm1, %v347_v52 }
  0x92   :  { %v1889_v58 = vpop.permute.xlu2 %204  ;;  %v306_v59 = vsel %vm302_vm4, %v299_v54, %v1498_v56  ;;  %v305_v7 = vsel %vm302_vm4, %v1849_v26, %v299_v54 }
  0x93   :  { %1423 = vmatpush.msk.msra.mxu2 %vm89_vm1, %v345_v57 }
  0x95   :  { %1424 = vmatpush.msk.msra.mxu2 %vm99_vm3, %v306_v59 }
  0x96   :  { %570 = vrot.lane.b32.xlu1 %v1796_v15, %s1678_s0 }
  0x97   :  { %1425 = vmatpush.msk.msra.mxu2 %vm99_vm3, %v304_v61  ;;  %v252_v62 = vpop.permute.xlu1 %251 }
  0x98   :  { %568 = vrot.lane.b32.xlu0 %v1791_v14, %s1678_s0  ;;  %528 = vrot.lane.b32.xlu2 %v1791_v14, %s1679_s29 }
  0x99   :  { %v338_v1 = vpop.permute.xlu0 %337  ;;  %928 = vmatpush.msra.mxu2 %v1744_v8 }
  0x9a   :  { %v346_v3 = vsel %vm343_vm2, %v338_v1, %v340_v34  ;;  %v1913_v5 = vpop.permute.xlu2 %417 }
  0x9b   :  { %1409 = vmatpush.msk.msra.mxu0 %vm88_vm5, %v346_v3  ;;  %929 = vmatpush.msra.mxu2 %v1717_v0  ;;  %v303_v0 = vsel %vm302_vm4, %v1858_v31, %v1832_v22 }
  0x9d   :  { %1410 = vmatpush.msk.msra.mxu0 %vm88_vm5, %v344_v6 }
  0x9e   :  { %738 = vrot.lane.b32.xlu1 %v1830_v21, %s1681_s6 }
  0x9f   :  { %1411 = vmatpush.msk.msra.mxu0 %vm98_vm6, %v305_v7  ;;  %v246_v8 = vpop.permute.xlu1 %245 }
  0xa0   :  { %534 = vrot.lane.b32.xlu0 %v1828_v20, %s1679_s29  ;;  %536 = vrot.lane.b32.xlu2 %v1830_v21, %s1679_s29 }
  0xa1   :  { %1412 = vmatpush.msk.msra.mxu0 %vm98_vm6, %v303_v0  ;;  %v250_v9 = vpop.permute.xlu0 %249 }
  0xa2   :  { %v257_v12 = vsel %vm253_vm7, %v250_v9, %v252_v62  ;;  %v1944_v13 = vpop.permute.xlu2 %1536 }
  0xa3   :  { %1426 = vmatpush.msk.msra.mxu2 %vm89_vm1, %v257_v12  ;;  %870 = vmatpush.msra.mxu0 %v1749_v10  ;;  %v1538_v38 = vunpack.i.l.bf16 %v1944_v13  ;;  %v1539_v40 = vunpack.i.h.bf16 %v1944_v13 }
  0xa5   :  { %871 = vmatpush.msra.mxu0 %v1739_v4  ;;  %v1595_v4 = vpack.i.bf16 %v1791_v14, %v1675_v2  ;;  %v215_v48 = vsel %vm212_vm9, %v1538_v38, %v1866_v42  ;;  %v2080_v38 = vld [vmem:[%s2500_s3 + $0x18] sm:$0xff] }
  0xa6   :  { %730 = vrot.lane.b32.xlu1 %v1791_v14, %s1681_s6 }
  0xa7   :  { %v203_v17 = vpop.permute.xlu1 %202 }
  0xa8   :  { %736 = vrot.lane.b32.xlu0 %v1828_v20, %s1681_s6  ;;  %732 = vrot.lane.b32.xlu2 %v1796_v15, %s1681_s6  ;;  %v214_v28 = vsel %vm212_vm9, %v203_v17, %v1889_v58  ;;  %v213_v53 = vsel %vm212_vm9, %v1539_v40, %v203_v17 }
  0xa9   :  { %v244_v10 = vpop.permute.xlu0 %243 }
  0xaa   :  { %v255_v18 = vsel %vm253_vm7, %v244_v10, %v246_v8  ;;  %v129_v22 = vpop.permute.xlu2 %128 }
  0xab   :  { %1427 = vmatpush.msk.msra.mxu2 %vm89_vm1, %v255_v18 }
  0xae   :  { %1591 = vrot.lane.b32.xlu1 %v1675_v2, %s1681_s6 }
  0xaf   :  { %v1522_v23 = vpop.permute.xlu1 %1521 }
  0xb0   :  { %1586 = vrot.lane.b32.xlu0 %v1585_v19, %s1680_s30  ;;  %v1524_v24 = vunpack.i.h.bf16 %v1522_v23  ;;  %v1523_v25 = vunpack.i.l.bf16 %v1522_v23  ;;  %1596 = vrot.lane.b32.xlu2 %v1595_v4, %s1680_s30 }
  0xb1   :  { %v211_v26 = vpop.permute.xlu0 %210 }
  0xb2   :  { %v216_v27 = vsel %vm212_vm9, %v1866_v42, %v211_v26  ;;  %v175_v29 = vsel %vm171_vm10, %v1523_v25, %v1524_v24  ;;  %v1542_v30 = vpop.permute.xlu2 %1541  ;;  %v2049_v26 = vld [vmem:[%s2500_s3] sm:$0xff] }
  0xb3   :  { %1428 = vmatpush.msk.msra.mxu2 %vm99_vm3, %v216_v27  ;;  %v1544_v46 = vunpack.i.h.bf16 %v1542_v30  ;;  %v1543_v47 = vunpack.i.l.bf16 %v1542_v30 }
  0xb5   :  { %1429 = vmatpush.msk.msra.mxu2 %vm99_vm3, %v214_v28  ;;  %v174_v42 = vsel %vm171_vm10, %v1543_v47, %v1523_v25 }
  0xb6   :  { %1606 = vrot.lane.b32.xlu1 %v1675_v2, %s1682_s11 }
  0xb7   :  { %934 = vmatpush.msra.mxu2 %v175_v29  ;;  %v1532_v31 = vpop.permute.xlu1 %1531 }
  0xb8   :  { %530 = vrot.lane.b32.xlu0 %v1796_v15, %s1679_s29  ;;  %v1534_v32 = vunpack.i.h.bf16 %v1532_v31  ;;  %v1533_v33 = vunpack.i.l.bf16 %v1532_v31  ;;  %458 = vrot.lane.b32.xlu2 %v1828_v20, %s1682_s11 }
  0xb9   :  { %v1517_v34 = vpop.permute.xlu0 %1516 }
  0xba   :  { %v1519_v35 = vunpack.i.h.bf16 %v1517_v34  ;;  %v1518_v36 = vunpack.i.l.bf16 %v1517_v34  ;;  %v173_v37 = vsel %vm171_vm10, %v1533_v33, %v1534_v32  ;;  %v1547_v44 = vpop.permute.xlu2 %1546  ;;  %v172_v56 = vsel %vm171_vm10, %v1544_v46, %v1533_v33 }
  0xbb   :  { %935 = vmatpush.msra.mxu2 %v173_v37  ;;  %v1548_v54 = vunpack.i.l.bf16 %v1547_v44  ;;  %v1549_v3 = vunpack.i.h.bf16 %v1547_v44  ;;  %v2075_v37 = vld [vmem:[%s2500_s3 + $0x10] sm:$0xff] }
  0xbc   :  { %v256_v2 = vsel %vm253_vm7, %v1518_v36, %v250_v9  ;;  %v254_v41 = vsel %vm253_vm7, %v1519_v35, %v244_v10 }
  0xbd   :  { %1413 = vmatpush.msk.msra.mxu0 %vm88_vm5, %v256_v2 }
  0xbe   :  { %460 = vrot.lane.b32.xlu1 %v1830_v21, %s1682_s11 }
  0xbf   :  { %1414 = vmatpush.msk.msra.mxu0 %vm88_vm5, %v254_v41  ;;  %v127_v45 = vpop.permute.xlu1 %126 }
  0xc0   :  { %1601 = vrot.lane.b32.xlu0 %v1600_v39, %s1680_s30  ;;  %v134_v49 = vsel %vm130_vm11, %v127_v45, %v129_v22  ;;  %454 = vrot.lane.b32.xlu2 %v1796_v15, %s1682_s11  ;;  %v133_v57 = vsel %vm130_vm11, %v1548_v54, %v127_v45 }
  0xc1   :  { %v1527_v51 = vpop.permute.xlu0 %1526  ;;  %1415 = vmatpush.msk.msra.mxu0 %vm98_vm6, %v215_v48  ;;  %1430 = vmatpush.msk.msra.mxu2 %vm89_vm1, %v134_v49  ;;  %v2109_v48 = vld [vmem:[%s2500_s3 + $0x20] sm:$0xff]  ;;  %v2114_v49 = vld [vmem:[%s2500_s3 + $0x28] sm:$0xff] }
  0xc2   :  { %v1528_v52 = vunpack.i.l.bf16 %v1527_v51  ;;  %v1529_v59 = vunpack.i.h.bf16 %v1527_v51  ;;  %v1562_v1 = vpop.permute.xlu2 %1561 }
  0xc3   :  { %1416 = vmatpush.msk.msra.mxu0 %vm98_vm6, %v213_v53  ;;  %v1564_v4 = vunpack.i.h.bf16 %v1562_v1  ;;  %v1563_v22 = vunpack.i.l.bf16 %v1562_v1 }
  0xc4   :  { %v425_v55 = vsel %vm421_vm12, %v1913_v5, %v1528_v52 }
  0xc5   :  { %876 = vmatpush.msra.mxu0 %v174_v42  ;;  %1433 = vmatpush.msk.msra.mxu3 %vm99_vm3, %v425_v55 }
  0xc7   :  { %877 = vmatpush.msra.mxu0 %v172_v56  ;;  %v123_v58 = vpop.permute.xlu1 %122  ;;  %v2131_v56 = vld [vmem:[%s2500_s3 + $0x30] sm:$0xff] }
  0xc8   :  { %452 = vrot.lane.b32.xlu0 %v1791_v14, %s1682_s11 }
  0xc9   :  { %v412_v61 = vpop.permute.xlu0 %411  ;;  %1417 = vmatpush.msk.msra.mxu0 %vm88_vm5, %v133_v57  ;;  %v2136_v57 = vld [vmem:[%s2500_s3 + $0x38] sm:$0xff] }
  0xca   :  { %v423_v62 = vsel %vm421_vm12, %v412_v61, %v1529_v59  ;;  %v655_v9 = vpop.permute.xlu2 %654 }
  0xcb   :  { %1434 = vmatpush.msk.msra.mxu3 %vm99_vm3, %v423_v62 }
  0xcd   :  { %1445 = vmatpush.msk.msrb.mxu3 %vm760_vm8, %v1683_v16 }
  0xcf   :  { %v410_v6 = vpop.permute.xlu1 %409 }
  0xd0   :  { %v422_v10 = vsel %vm421_vm12, %v410_v6, %v412_v61 }
  0xd1   :  { %v121_v7 = vpop.permute.xlu0 %120 }
  0xd2   :  { %v132_v8 = vsel %vm130_vm11, %v121_v7, %v123_v58  ;;  %v131_v0 = vsel %vm130_vm11, %v1549_v3, %v121_v7  ;;  %v621_v18 = vpop.permute.xlu2 %620 }
  0xd3   :  { %1431 = vmatpush.msk.msra.mxu2 %vm89_vm1, %v132_v8  ;;  %1418 = vmatpush.msk.msra.mxu0 %vm88_vm5, %v131_v0 }
  0xd4   :  { %938 = vmatmul.f32.vlgmr.msra.gmra.mxu2 %v2049_v26  ;;  %880 = vmatmul.f32.vlgmr.msra.gmra.mxu0 %v2049_v26 }
  0xd5   :  { %1458 = vmatpush.msk.msrb.mxu2 %vm760_vm8, %v1683_v16 }
  0xd7   :  { %v1557_v12 = vpop.permute.xlu1 %1556 }
  0xd8   :  { %v1559_v23 = vunpack.i.h.bf16 %v1557_v12  ;;  %v1558_v24 = vunpack.i.l.bf16 %v1557_v12 }
  0xd9   :  { %v416_v13 = vpop.permute.xlu0 %415 }
  0xda   :  { %v424_v17 = vsel %vm421_vm12, %v416_v13, %v1913_v5  ;;  %v2054_v5 = vld [vmem:[%s2500_s3 + $0x8] sm:$0xff]  ;;  %v706_v31 = vsel %vm384_vm0, %v1558_v24, %v1559_v23  ;;  %v2068_v32 = vsel %vm384_vm0, %v1559_v23, %v1564_v4  ;;  %v617_v35 = vpop.permute.xlu2 %616 }
  0xdb   :  { %1420 = vmatpush.msk.msra.mxu1 %vm98_vm6, %v424_v17  ;;  %1379 = vmatmul.msk.f32.vlgmr.msra.gmra.mxu3 %vm851_vm13, %v2054_v5 }
  0xdc   :  { %941 = vmatmul.f32.gmra.mxu2 %v2075_v37  ;;  %883 = vmatmul.f32.gmra.mxu0 %v2075_v37 }
  0xdd   :  { %1421 = vmatpush.msk.msra.mxu1 %vm98_vm6, %v422_v10 }
  0xde   :  { %1375 = vmatmul.msk.f32.vlgmr.msra.gmra.mxu1 %vm851_vm13, %v2054_v5 }
  0xdf   :  { %v663_v19 = vpop.permute.xlu1 %662 }
  0xe1   :  { %v1552_v25 = vpop.permute.xlu0 %1551 }
  0xe2   :  { %v1554_v27 = vunpack.i.h.bf16 %v1552_v25  ;;  %v1553_v28 = vunpack.i.l.bf16 %v1552_v25  ;;  %v575_v47 = vpop.permute.xlu2 %574 }
  0xe3   :  { %1380 = vmatmul.msk.f32.gmra.mxu3 %vm851_vm13, %v2080_v38 }
  0xe4   :  { %v708_v29 = vsel %vm384_vm0, %v1553_v28, %v1554_v27  ;;  %v2064_v30 = vsel %vm384_vm0, %v1554_v27, %v1563_v22  ;;  %944 = vmatmul.f32.gmra.mxu2 %v2109_v48  ;;  %886 = vmatmul.f32.gmra.mxu0 %v2109_v48 }
  0xe5   :  { %980 = vmatpush.msrb.mxu1 %v708_v29  ;;  %1038 = vmatpush.msrb.mxu0 %v2064_v30 }
  0xe6   :  { %1376 = vmatmul.msk.f32.gmra.mxu1 %vm851_vm13, %v2080_v38 }
  0xe7   :  { %981 = vmatpush.msrb.mxu1 %v706_v31  ;;  %1039 = vmatpush.msrb.mxu0 %v2068_v32  ;;  %v1567_v33 = vpop.permute.xlu1 %1566 }
  0xe8   :  { %v1568_v34 = vunpack.i.l.bf16 %v1567_v33  ;;  %v1569_v40 = vunpack.i.h.bf16 %v1567_v33 }
  0xe9   :  { %v661_v36 = vpop.permute.xlu0 %660 }
  0xea   :  { %v668_v2 = vsel %vm343_vm2, %v661_v36, %v663_v19  ;;  %v2084_v39 = vsel %vm343_vm2, %v663_v19, %v1568_v34  ;;  %v1582_v55 = vpop.permute.xlu2 %1581 }
  0xeb   :  { %1435 = vmatpush.msk.msrb.mxu1 %vm88_vm5, %v668_v2  ;;  %1448 = vmatpush.msk.msrb.mxu0 %vm89_vm1, %v2084_v39  ;;  %v1584_v10 = vunpack.i.h.bf16 %v1582_v55 }
  0xec   :  { %1381 = vmatmul.msk.f32.gmra.mxu3 %vm851_vm13, %v2114_v49  ;;  %947 = vmatmul.f32.gmra.mxu2 %v2131_v56 }
  0xed   :  { %889 = vmatmul.f32.gmra.mxu0 %v2131_v56 }
  0xee   :  { %1377 = vmatmul.msk.f32.gmra.mxu1 %vm851_vm13, %v2114_v49 }
  0xef   :  { %v615_v41 = vpop.permute.xlu1 %614 }
  0xf0   :  { %v626_v54 = vsel %vm302_vm4, %v615_v41, %v617_v35 }
  0xf1   :  { %v657_v44 = vpop.permute.xlu0 %656 }
  0xf2   :  { %v666_v45 = vsel %vm343_vm2, %v655_v9, %v657_v44  ;;  %v2099_v46 = vsel %vm343_vm2, %v657_v44, %v1569_v40  ;;  %v529_v3 = vpop.permute.xlu2 %528 }
  0xf3   :  { %1436 = vmatpush.msk.msrb.mxu1 %vm88_vm5, %v666_v45  ;;  %1449 = vmatpush.msk.msrb.mxu0 %vm89_vm1, %v2099_v46  ;;  %v538_v23 = vsel %vm212_vm9, %v1584_v10, %v529_v3 }
  0xf4   :  { %1382 = vmatmul.msk.f32.gmra.mxu3 %vm851_vm13, %v2136_v57 }
  0xf6   :  { %1378 = vmatmul.msk.f32.gmra.mxu1 %vm851_vm13, %v2136_v57 }
  0xf7   :  { %v1577_v51 = vpop.permute.xlu1 %1576 }
  0xf8   :  { %v1578_v42 = vunpack.i.l.bf16 %v1577_v51  ;;  %v1579_v7 = vunpack.i.h.bf16 %v1577_v51 }
  0xf9   :  { %v623_v52 = vpop.permute.xlu0 %622 }
  0xfa   :  { %v628_v53 = vsel %vm302_vm4, %v621_v18, %v623_v52  ;;  %v580_v58 = vsel %vm253_vm7, %v1578_v42, %v575_v47  ;;  %v537_v13 = vpop.permute.xlu2 %536  ;;  %v1583_v18 = vunpack.i.l.bf16 %v1582_v55 }
  0xfb   :  { %1437 = vmatpush.msk.msrb.mxu1 %vm98_vm6, %v628_v53 }
  0xfd   :  { %1438 = vmatpush.msk.msrb.mxu1 %vm98_vm6, %v626_v54 }
  0xff   :  { %986 = vmatpush.msrb.mxu1 %v1828_v20 }
 0x100   :  { %v577_v59 = vpop.permute.xlu1 %576 }
 0x101   :  { %987 = vmatpush.msrb.mxu1 %v1791_v14  ;;  %v2167_v9 = vsel %vm253_vm7, %v575_v47, %v577_v59 }
 0x102   :  { %v1572_v61 = vpop.permute.xlu0 %1571  ;;  %v733_v24 = vpop.permute.xlu2 %732 }
 0x103   :  { %v1574_v62 = vunpack.i.h.bf16 %v1572_v61  ;;  %v1573_v1 = vunpack.i.l.bf16 %v1572_v61  ;;  %1439 = vmatpush.msk.msrb.mxu1 %vm88_vm5, %v580_v58 }
 0x105   :  { %v2150_v20 = vsel %vm302_vm4, %v623_v52, %v1573_v1  ;;  %v2156_v6 = vsel %vm302_vm4, %v617_v35, %v1574_v62 }
 0x106   :  { %1450 = vmatpush.msk.msrb.mxu0 %vm99_vm3, %v2150_v20 }
 0x108   :  { %1451 = vmatpush.msk.msrb.mxu0 %vm99_vm3, %v2156_v6  ;;  %v571_v14 = vpop.permute.xlu1 %570 }
 0x10a   :  { %v569_v8 = vpop.permute.xlu0 %568  ;;  %1044 = vmatpush.msrb.mxu0 %v1830_v21  ;;  %v1597_v33 = vpop.permute.xlu2 %1596 }
 0x10b   :  { %v578_v0 = vsel %vm253_vm7, %v1579_v7, %v569_v8  ;;  %v2173_v12 = vsel %vm253_vm7, %v569_v8, %v571_v14  ;;  %v1599_v36 = vunpack.i.h.bf16 %v1597_v33  ;;  %v1598_v2 = vunpack.i.l.bf16 %v1597_v33 }
 0x10c   :  { %1440 = vmatpush.msk.msrb.mxu1 %vm88_vm5, %v578_v0  ;;  %1045 = vmatpush.msrb.mxu0 %v1796_v15 }
 0x10e   :  { %1452 = vmatpush.msk.msrb.mxu0 %vm89_vm1, %v2167_v9 }
 0x110   :  { %1453 = vmatpush.msk.msrb.mxu0 %vm89_vm1, %v2173_v12  ;;  %v739_v17 = vpop.permute.xlu1 %738 }
 0x112   :  { %v535_v19 = vpop.permute.xlu0 %534  ;;  %v459_v53 = vpop.permute.xlu2 %458 }
 0x113   :  { %v540_v4 = vsel %vm212_vm9, %v1583_v18, %v535_v19  ;;  %v2180_v22 = vsel %vm212_vm9, %v535_v19, %v537_v13 }
 0x114   :  { %1441 = vmatpush.msk.msrb.mxu1 %vm98_vm6, %v540_v4  ;;  %1454 = vmatpush.msk.msrb.mxu0 %vm99_vm3, %v2180_v22 }
 0x116   :  { %1442 = vmatpush.msk.msrb.mxu1 %vm98_vm6, %v538_v23 }
 0x118   :  { %v731_v25 = vpop.permute.xlu1 %730 }
 0x119   :  { %v742_v29 = vsel %vm421_vm12, %v731_v25, %v733_v24 }
 0x11a   :  { %v737_v27 = vpop.permute.xlu0 %736  ;;  %v455_v1 = vpop.permute.xlu2 %454 }
 0x11b   :  { %v744_v28 = vsel %vm421_vm12, %v737_v27, %v739_v17 }
 0x11c   :  { %1446 = vmatpush.msk.msrb.mxu3 %vm98_vm6, %v744_v28 }
 0x11e   :  { %1447 = vmatpush.msk.msrb.mxu3 %vm98_vm6, %v742_v29 }
 0x11f   :  { %1383 = vmatmul.msk.f32.vlgmr.msrb.gmra.mxu3 %vm851_vm13, %v2054_v5 }
 0x120   :  { %1477 = vmatpush.msk.msra.mxu3 %vm760_vm8, %v1683_v16  ;;  %v1592_v31 = vpop.permute.xlu1 %1591  ;;  %v502_v16 = vsel %vm171_vm10, %v1598_v2, %v1599_v36 }
 0x121   :  { %v1594_v34 = vunpack.i.h.bf16 %v1592_v31  ;;  %v1593_v35 = vunpack.i.l.bf16 %v1592_v31 }
 0x122   :  { %v1587_v40 = vpop.permute.xlu0 %1586 }
 0x123   :  { %v1589_v41 = vunpack.i.h.bf16 %v1587_v40  ;;  %v1588_v44 = vunpack.i.l.bf16 %v1587_v40  ;;  %v745_v45 = vsel %vm421_vm12, %v739_v17, %v1593_v35  ;;  %v743_v63 = vsel %vm421_vm12, %v733_v24, %v1594_v34 }
 0x124   :  { %1459 = vmatpush.msk.msrb.mxu2 %vm99_vm3, %v745_v45  ;;  %1478 = vmatpush.msk.msra.mxu3 %vm99_vm3, %v745_v45 }
 0x125   :  { %v504_v11 = vsel %vm171_vm10, %v1588_v44, %v1589_v41 }
 0x126   :  { %992 = vmatpush.msrb.mxu1 %v504_v11  ;;  %1460 = vmatpush.msk.msrb.mxu2 %vm99_vm3, %v743_v63 }
 0x127   :  { %1479 = vmatpush.msk.msra.mxu3 %vm99_vm3, %v743_v63  ;;  %1387 = vmatmul.msk.f32.vlgmr.msrb.gmra.mxu2 %vm851_vm13, %v2054_v5 }
 0x128   :  { %v1607_v47 = vpop.permute.xlu1 %1606  ;;  %993 = vmatpush.msrb.mxu1 %v502_v16  ;;  %1384 = vmatmul.msk.f32.gmra.mxu3 %vm851_vm13, %v2080_v38 }
 0x129   :  { %v1608_v51 = vunpack.i.l.bf16 %v1607_v47 }
 0x12a   :  { %v531_v52 = vpop.permute.xlu0 %530 }
 0x12b   :  { %v539_v54 = vsel %vm212_vm9, %v529_v3, %v531_v52  ;;  %v464_v42 = vsel %vm130_vm11, %v1608_v51, %v459_v53 }
 0x12c   :  { %1455 = vmatpush.msk.msrb.mxu0 %vm99_vm3, %v539_v54  ;;  %1443 = vmatpush.msk.msrb.mxu1 %vm88_vm5, %v464_v42 }
 0x12f   :  { %1388 = vmatmul.msk.f32.gmra.mxu2 %vm851_vm13, %v2080_v38  ;;  %v1609_v38 = vunpack.i.h.bf16 %v1607_v47 }
 0x130   :  { %1385 = vmatmul.msk.f32.gmra.mxu3 %vm851_vm13, %v2114_v49  ;;  %v461_v61 = vpop.permute.xlu1 %460 }
 0x131   :  { %v465_v3 = vsel %vm130_vm11, %v459_v53, %v461_v61 }
 0x132   :  { %v1602_v5 = vpop.permute.xlu0 %1601 }
 0x133   :  { %v1604_v55 = vunpack.i.h.bf16 %v1602_v5  ;;  %v1603_v58 = vunpack.i.l.bf16 %v1602_v5 }
 0x135   :  { %v505_v59 = vsel %vm171_vm10, %v1589_v41, %v1603_v58  ;;  %v503_v62 = vsel %vm171_vm10, %v1599_v36, %v1604_v55 }
 0x136   :  { %1050 = vmatpush.msrb.mxu0 %v505_v59 }
 0x137   :  { %1389 = vmatmul.msk.f32.gmra.mxu2 %vm851_vm13, %v2114_v49 }
 0x138   :  { %1051 = vmatpush.msrb.mxu0 %v503_v62  ;;  %1386 = vmatmul.msk.f32.gmra.mxu3 %vm851_vm13, %v2136_v57 }
 0x13a   :  { %v453_v14 = vpop.permute.xlu0 %452  ;;  %1456 = vmatpush.msk.msrb.mxu0 %vm89_vm1, %v465_v3 }
 0x13b   :  { %v462_v7 = vsel %vm130_vm11, %v1609_v38, %v453_v14  ;;  %v463_v8 = vsel %vm130_vm11, %v453_v14, %v455_v1 }
 0x13c   :  { %1444 = vmatpush.msk.msrb.mxu1 %vm88_vm5, %v462_v7  ;;  %1457 = vmatpush.msk.msrb.mxu0 %vm89_vm1, %v463_v8 }
 0x13d   :  { %996 = vmatmul.f32.vlgmr.msrb.gmra.mxu1 %v2049_v26  ;;  %1054 = vmatmul.f32.vlgmr.msrb.gmra.mxu0 %v2049_v26 }
 0x13e   :  { %1461 = vmatpush.msra.mxu1 %v2064_v30 }
 0x140   :  { %1462 = vmatpush.msra.mxu1 %v2068_v32  ;;  %1390 = vmatmul.msk.f32.vlgmr.msra.gmra.mxu3 %vm851_vm13, %v2136_v57 }
 0x142   :  { %1463 = vmatpush.msk.msra.mxu1 %vm89_vm1, %v2084_v39 }
 0x144   :  { %1464 = vmatpush.msk.msra.mxu1 %vm89_vm1, %v2099_v46 }
 0x145   :  { %999 = vmatmul.f32.gmra.mxu1 %v2075_v37  ;;  %1057 = vmatmul.f32.gmra.mxu0 %v2075_v37 }
 0x146   :  { %1465 = vmatpush.msk.msra.mxu1 %vm99_vm3, %v2150_v20 }
 0x148   :  { %1466 = vmatpush.msk.msra.mxu1 %vm99_vm3, %v2156_v6 }
 0x14a   :  { %1467 = vmatpush.msra.mxu1 %v1830_v21 }
 0x14c   :  { %1468 = vmatpush.msra.mxu1 %v1796_v15 }
 0x14d   :  { %1002 = vmatmul.f32.gmra.mxu1 %v2109_v48  ;;  %1060 = vmatmul.f32.gmra.mxu0 %v2109_v48 }
 0x14e   :  { %1469 = vmatpush.msk.msra.mxu1 %vm89_vm1, %v2167_v9 }
 0x150   :  { %1470 = vmatpush.msk.msra.mxu1 %vm89_vm1, %v2173_v12 }
 0x151   :  { %v881_v15 = vpop.f32.mrf.mxu0 }
 0x152   :  { %1471 = vmatpush.msk.msra.mxu1 %vm99_vm3, %v2180_v22 }
 0x154   :  { %1472 = vmatpush.msk.msra.mxu1 %vm99_vm3, %v539_v54 }
 0x155   :  { %1005 = vmatmul.f32.gmra.mxu1 %v2131_v56 }
 0x156   :  { %1473 = vmatpush.msra.mxu1 %v505_v59 }
 0x157   :  { %v939_v30 = vpop.f32.mrf.mxu2 }
 0x158   :  { %1474 = vmatpush.msra.mxu1 %v503_v62 }
 0x159   :  { %v884_v39 = vpop.f32.mrf.mxu0 }
 0x15a   :  { %1475 = vmatpush.msk.msra.mxu1 %vm89_vm1, %v465_v3 }
 0x15b   :  { %v910_v21 = vpop.f32.mrf.mxu1 }
 0x15c   :  { %1476 = vmatpush.msk.msra.mxu1 %vm89_vm1, %v463_v8  ;;  %v911_v60 = vadd.f32 %v910_v21, %v881_v15 }
 0x15d   :  { %1063 = vmatmul.f32.vlgmr.msra.gmra.mxu1 %v2131_v56 }
 0x15e   :  { %v1391_v26 = vmul.f32 -1.442695, %v911_v60  ;;  %v968_v50 = vpop.f32.mrf.mxu3 }
 0x15f   :  { %v969_v32 = vadd.f32 %v968_v50, %v939_v30  ;;  %v942_v43 = vpop.f32.mrf.mxu2 }
 0x160   :  { %1610 = vpow2.f32 %v1391_v26 }
 0x161   :  { %v1392_v37 = vmul.f32 -1.442695, %v969_v32  ;;  %v887_v13 = vpop.f32.mrf.mxu0 }
 0x163   :  { %v913_v46 = vpop.f32.mrf.mxu1  ;;  %1612 = vpow2.f32 %v1392_v37 }
 0x164   :  { %v914_v48 = vadd.f32 %v913_v46, %v884_v39 }
 0x166   :  { %v1611_v49 = vpop.eup %1610  ;;  %v1395_v20 = vmul.f32 -1.442695, %v914_v48  ;;  %v971_v6 = vpop.f32.mrf.mxu3 }
 0x167   :  { %v1108_v57 = vadd.f32 1.0, %v1611_v49  ;;  %v972_v56 = vadd.f32 %v971_v6, %v942_v43  ;;  %v945_v27 = vpop.f32.mrf.mxu2  ;;  %v1328_v43 = vld [vmem:[%s2501_s2] sm:$0xff] }
 0x169   :  { %1614 = vrcp.f32 %v1108_v57  ;;  %v1613_v0 = vpop.eup %1612  ;;  %v1396_v9 = vmul.f32 -1.442695, %v972_v56  ;;  %v1121_v40 = vand.u32 2147483647, %v1108_v57  ;;  %v1123_v41 = vand.u32 2147483648, %v1108_v57 }
 0x16a   :  { %1616 = vpow2.f32 %v1395_v20  ;;  %v2283_v12 = vadd.f32 1.0, %v1613_v0  ;;  %vm1117_vm14 = vweird.f32 %v1108_v57  ;;  %v890_v45 = vpop.f32.mrf.mxu0 }
 0x16b   :  { %1618 = vpow2.f32 %v1396_v9  ;;  %v916_v17 = vpop.f32.mrf.mxu1  ;;  %vm2311_vm3 = vcmp.eq.f32.partialorder %v1121_v40, 8.507059e+37  ;;  %v1124_v5 = vor.u32 1.1754944e-38, %v1123_v41 }
 0x16c   :  { %1620 = vrcp.f32 %v2283_v12  ;;  %v917_v18 = vadd.f32 %v916_v17, %v887_v13  ;;  %vm1132_vm0 = vweird.f32 %v2283_v12  ;;  %v1136_v38 = vand.u32 2147483647, %v2283_v12 }
 0x16d   :  { %v1138_v8 = vand.u32 2147483648, %v2283_v12 }
 0x16e   :  { %v1399_v23 = vmul.f32 -1.442695, %v917_v18  ;;  %vm2358_vm12 = vcmp.eq.f32.partialorder %v1136_v38, 8.507059e+37 }
 0x16f   :  { %v2286_v10 = vpop.eup %1614  ;;  %v974_v28 = vpop.f32.mrf.mxu3  ;;  %v1139_v9 = vor.u32 1.1754944e-38, %v1138_v8 }
 0x170   :  { %v1617_v19 = vpop.eup %1616  ;;  %v1113_v4 = vmul.f32 %v2286_v10, %v1108_v57  ;;  %v975_v33 = vadd.f32 %v974_v28, %v945_v27  ;;  %vm1118_vm15 = vweird.f32 %v2286_v10  ;;  %v948_v7 = vpop.f32.mrf.mxu2 }
 0x171   :  { %v2289_v22 = vadd.f32 1.0, %v1617_v19  ;;  %v1619_v25 = vpop.eup %1618  ;;  %vm2307_vm2 = vmor %vm1117_vm14, %vm1118_vm15 }
 0x172   :  { %v1114_v24 = vsub.f32 1.0, %v1113_v4  ;;  %v2292_v29 = vpop.eup %1620  ;;  %v2294_v31 = vadd.f32 1.0, %v1619_v25  ;;  %v1400_v2 = vmul.f32 -1.442695, %v975_v33 }
 0x173   :  { %1622 = vrcp.f32 %v2289_v22  ;;  %v1128_v34 = vmul.f32 %v2292_v29, %v2283_v12  ;;  %v1199_v35 = vand.u32 2147483648, %v2289_v22  ;;  %vm1193_vm1 = vweird.f32 %v2289_v22  ;;  %v919_v53 = vpop.f32.mrf.mxu1 }
 0x174   :  { %1624 = vpow2.f32 %v1399_v23  ;;  %v1115_v36 = vmul.f32 %v2286_v10, %v1114_v24  ;;  %v1197_v47 = vand.u32 2147483647, %v2289_v22  ;;  %vm1208_vm4 = vweird.f32 %v2294_v31  ;;  %v1329_v24 = vld [vmem:[%s2501_s2 + $0x8] sm:$0xff] }
 0x175   :  { %1626 = vrcp.f32 %v2294_v31  ;;  %v1129_v44 = vsub.f32 1.0, %v1128_v34  ;;  %v1200_v11 = vor.u32 1.1754944e-38, %v1199_v35  ;;  %v1214_v58 = vand.u32 2147483648, %v2294_v31 }
 0x176   :  { %1628 = vpow2.f32 %v1400_v2  ;;  %v1116_v16 = vadd.f32 %v2286_v10, %v1115_v36  ;;  %v920_v61 = vadd.f32 %v919_v53, %v890_v45  ;;  %vm1133_vm6 = vweird.f32 %v2292_v29 }
 0x177   :  { %v1130_v55 = vmul.f32 %v2292_v29, %v1129_v44  ;;  %v977_v60 = vpop.f32.mrf.mxu3  ;;  %v1212_v30 = vand.u32 2147483647, %v2294_v31  ;;  %vm1198_vm9 = vcmp.eq.f32.partialorder %v1197_v47, 8.507059e+37  ;;  %vm2341_vm10 = vmor %vm1132_vm0, %vm1133_vm6  ;;  %v1215_v57 = vor.u32 1.1754944e-38, %v1214_v58 }
 0x178   :  { %v1120_v14 = vsel %vm2307_vm2, %v2286_v10, %v1116_v16  ;;  %v978_v39 = vadd.f32 %v977_v60, %v948_v7 }
 0x179   :  { %v1623_v63 = vpop.eup %1622  ;;  %v1131_v26 = vadd.f32 %v2292_v29, %v1130_v55  ;;  %v1125_v20 = vsel %vm2311_vm3, %v1124_v5, %v1120_v14  ;;  %vm1213_vm13 = vcmp.eq.f32.partialorder %v1212_v30, 8.507059e+37 }
 0x17a   :  { %v1625_v51 = vpop.eup %1624  ;;  %v1189_v52 = vmul.f32 %v1623_v63, %v2289_v22  ;;  %vm1194_vm5 = vweird.f32 %v1623_v63 }
 0x17b   :  { %v2318_v59 = vadd.f32 1.0, %v1625_v51  ;;  %v1627_v62 = vpop.eup %1626  ;;  %vm2333_vm7 = vmor %vm1193_vm1, %vm1194_vm5  ;;  %v1135_v17 = vsel %vm2341_vm10, %v2292_v29, %v1131_v26 }
 0x17c   :  { %v1190_v1 = vsub.f32 1.0, %v1189_v52  ;;  %v1204_v3 = vmul.f32 %v1627_v62, %v2294_v31  ;;  %v1629_v15 = vpop.eup %1628  ;;  %vm1209_vm8 = vweird.f32 %v1627_v62  ;;  %v1140_v29 = vsel %vm2358_vm12, %v1139_v9, %v1135_v17 }
 0x17d   :  { %1630 = vrcp.f32 %v2318_v59  ;;  %v1261_v37 = vadd.f32 1.0, %v1629_v15  ;;  %vm2352_vm11 = vmor %vm1208_vm4, %vm1209_vm8  ;;  %v1273_v4 = vand.u32 2147483647, %v2318_v59  ;;  %v1275_v22 = vand.u32 2147483648, %v2318_v59 }
 0x17e   :  { %v1191_v21 = vmul.f32 %v1623_v63, %v1190_v1  ;;  %1632 = vtanh.f32 %v920_v61  ;;  %v1205_v32 = vsub.f32 1.0, %v1204_v3  ;;  %vm1269_vm14 = vweird.f32 %v2318_v59 }
 0x17f   :  { %1634 = vrcp.f32 %v1261_v37  ;;  %vm2376_vm0 = vcmp.eq.f32.partialorder %v1273_v4, 8.507059e+37  ;;  %v1276_v41 = vor.u32 1.1754944e-38, %v1275_v22  ;;  %vm1284_vm2 = vweird.f32 %v1261_v37 }
 0x180   :  { %v1192_v46 = vadd.f32 %v1623_v63, %v1191_v21  ;;  %v1206_v49 = vmul.f32 %v1627_v62, %v1205_v32  ;;  %1636 = vtanh.f32 %v978_v39  ;;  %v1290_v45 = vand.u32 2147483648, %v1261_v37 }
 0x181   :  { %v1288_v47 = vand.u32 2147483647, %v1261_v37 }
 0x182   :  { %v1196_v56 = vsel %vm2333_vm7, %v1623_v63, %v1192_v46  ;;  %v1207_v10 = vadd.f32 %v1627_v62, %v1206_v49  ;;  %v1291_v42 = vor.u32 1.1754944e-38, %v1290_v45 }
 0x183   :  { %v1631_v12 = vpop.eup %1630  ;;  %v1201_v13 = vsel %vm1198_vm9, %v1200_v11, %v1196_v56  ;;  %vm1289_vm5 = vcmp.eq.f32.partialorder %v1288_v47, 8.507059e+37 }
 0x184   :  { %v1633_v18 = vpop.eup %1632  ;;  %v1265_v19 = vmul.f32 %v1631_v12, %v2318_v59  ;;  %v1330_v23 = vmul.f32 %v1328_v43, %v1201_v13  ;;  %v1211_v27 = vsel %vm2352_vm11, %v1627_v62, %v1207_v10  ;;  %vm1270_vm15 = vweird.f32 %v1631_v12 }
 0x185   :  { %v1332_v25 = vmul.f32 %v1633_v18, %v1125_v20  ;;  %v1216_v31 = vsel %vm1213_vm13, %v1215_v57, %v1211_v27  ;;  %v1635_v33 = vpop.eup %1634  ;;  %vm1271_vm1 = vmor %vm1269_vm14, %vm1270_vm15 }
 0x186   :  { %v1266_v28 = vsub.f32 1.0, %v1265_v19  ;;  %v1331_v35 = vmul.f32 %v1329_v24, %v1216_v31  ;;  %v1637_v36 = vpop.eup %1636  ;;  %v1280_v44 = vmul.f32 %v1635_v33, %v1261_v37  ;;  %vm1285_vm3 = vweird.f32 %v1635_v33 }
 0x187   :  { %v1334_v34 = vadd.f32 %v1332_v25, %v1330_v23  ;;  %v1333_v63 = vmul.f32 %v1637_v36, %v1140_v29  ;;  %vm1286_vm4 = vmor %vm1284_vm2, %vm1285_vm3 }
 0x188   :  { %v1267_v2 = vmul.f32 %v1631_v12, %v1266_v28  ;;  %v1281_v16 = vsub.f32 1.0, %v1280_v44 }
 0x189   :  { %1638 = vtanh.f32 %v1334_v34  ;;  %1340 = vst [vmem:[%s2502_s5] sm:$0xff] %v1334_v34  ;;  %v1335_v51 = vadd.f32 %v1333_v63, %v1331_v35 }
 0x18a   :  { %v1268_v11 = vadd.f32 %v1631_v12, %v1267_v2  ;;  %v1282_v53 = vmul.f32 %v1635_v33, %v1281_v16 }
 0x18b   :  { %1640 = vtanh.f32 %v1335_v51  ;;  %1341 = vst [vmem:[%s2502_s5 + $0x8] sm:$0xff] %v1335_v51 }
 0x18c   :  { %v1272_v52 = vsel %vm1271_vm1, %v1631_v12, %v1268_v11  ;;  %v1283_v5 = vadd.f32 %v1635_v33, %v1282_v53 }
 0x18d   :  { %v1277_v54 = vsel %vm2376_vm0, %v1276_v41, %v1272_v52 }
 0x18e   :  { %v1287_v58 = vsel %vm1286_vm4, %v1635_v33, %v1283_v5 }
 0x18f   :  { %v1639_v55 = vpop.eup %1638  ;;  %v1292_v61 = vsel %vm1289_vm5, %v1291_v42, %v1287_v58 }
 0x190   :  { %v1338_v59 = vmul.f32 %v1639_v55, %v1277_v54 }
 0x191   :  { %v1641_v62 = vpop.eup %1640 }
 0x192   :  { %1342 = vst [vmem:[%s2503_s4] sm:$0xff] %v1338_v59  ;;  %v1339_v1 = vmul.f32 %v1641_v62, %v1292_v61 }
 0x194   :  { %1343 = vst [vmem:[%s2503_s4 + $0x8] sm:$0xff] %v1339_v1 }
 0x1a2   :  { %v1026_v38 = vpop.f32.mrf.mxu3 }
 0x1aa   :  { %v1084_v3 = vpop.f32.mrf.mxu2 }
 0x1ab   :  { %v1029_v21 = vpop.f32.mrf.mxu3 }
 0x1b2   :  { %v1087_v30 = vpop.f32.mrf.mxu2 }
 0x1b3   :  { %v1032_v49 = vpop.f32.mrf.mxu3 }
 0x1ba   :  { %v997_v14 = vpop.f32.mrf.mxu1  ;;  %v1055_v7 = vpop.f32.mrf.mxu0 }
 0x1bb   :  { %v1027_v8 = vadd.f32 %v1026_v38, %v997_v14  ;;  %v1085_v15 = vadd.f32 %v1084_v3, %v1055_v7  ;;  %v1090_v56 = vpop.f32.mrf.mxu2  ;;  %v1035_v24 = vpop.f32.mrf.mxu3 }
 0x1bd   :  { %v1393_v60 = vmul.f32 -1.442695, %v1027_v8  ;;  %v1394_v26 = vmul.f32 -1.442695, %v1085_v15 }
 0x1bf   :  { %1642 = vpow2.f32 %v1393_v60 }
 0x1c0   :  { %1644 = vpow2.f32 %v1394_v26 }
 0x1c2   :  { %v1000_v50 = vpop.f32.mrf.mxu1  ;;  %v1058_v32 = vpop.f32.mrf.mxu0 }
 0x1c3   :  { %v1030_v37 = vadd.f32 %v1029_v21, %v1000_v50  ;;  %v1088_v39 = vadd.f32 %v1087_v30, %v1058_v32  ;;  %v1093_v42 = vpop.f32.mrf.mxu3  ;;  %v1403_v32 = vld [vmem:[%s2501_s2 + $0x10] sm:$0xff] }
 0x1c5   :  { %v1643_v46 = vpop.eup %1642  ;;  %v1397_v48 = vmul.f32 -1.442695, %v1030_v37  ;;  %v1398_v43 = vmul.f32 -1.442695, %v1088_v39 }
 0x1c6   :  { %v1645_v57 = vpop.eup %1644  ;;  %v2396_v20 = vadd.f32 1.0, %v1643_v46 }
 0x1c7   :  { %v2398_v6 = vadd.f32 1.0, %v1645_v57  ;;  %1646 = vpow2.f32 %v1397_v48 }
 0x1c8   :  { %1648 = vrcp.f32 %v2396_v20  ;;  %vm1147_vm6 = vweird.f32 %v2396_v20  ;;  %v1151_v41 = vand.u32 2147483647, %v2396_v20  ;;  %v1153_v44 = vand.u32 2147483648, %v2396_v20 }
 0x1c9   :  { %1650 = vrcp.f32 %v2398_v6  ;;  %vm1162_vm7 = vweird.f32 %v2398_v6  ;;  %v1166_v11 = vand.u32 2147483647, %v2398_v6  ;;  %v1168_v47 = vand.u32 2147483648, %v2398_v6 }
 0x1ca   :  { %1652 = vpow2.f32 %v1398_v43  ;;  %v1003_v0 = vpop.f32.mrf.mxu1  ;;  %v1061_v9 = vpop.f32.mrf.mxu0  ;;  %vm2435_vm10 = vcmp.eq.f32.partialorder %v1151_v41, 8.507059e+37  ;;  %v1154_v59 = vor.u32 1.1754944e-38, %v1153_v44 }
 0x1cb   :  { %v1033_v12 = vadd.f32 %v1032_v49, %v1003_v0  ;;  %v1091_v13 = vadd.f32 %v1090_v56, %v1061_v9  ;;  %vm1167_vm5 = vcmp.eq.f32.partialorder %v1166_v11, 8.507059e+37 }
 0x1cd   :  { %v1647_v17 = vpop.eup %1646  ;;  %v1401_v10 = vmul.f32 -1.442695, %v1033_v12  ;;  %v1402_v18 = vmul.f32 -1.442695, %v1091_v13 }
 0x1ce   :  { %v2402_v19 = vpop.eup %1648  ;;  %v2404_v4 = vadd.f32 1.0, %v1647_v17 }
 0x1cf   :  { %v2406_v22 = vpop.eup %1650  ;;  %v1143_v23 = vmul.f32 %v2402_v19, %v2396_v20  ;;  %1654 = vpow2.f32 %v1401_v10  ;;  %vm1148_vm8 = vweird.f32 %v2402_v19  ;;  %v1169_v10 = vor.u32 1.1754944e-38, %v1168_v47 }
 0x1d0   :  { %v1653_v25 = vpop.eup %1652  ;;  %1656 = vrcp.f32 %v2404_v4  ;;  %v1158_v28 = vmul.f32 %v2406_v22, %v2398_v6  ;;  %v1229_v16 = vand.u32 2147483648, %v2404_v4  ;;  %vm1223_vm9 = vweird.f32 %v2404_v4  ;;  %vm2446_vm12 = vmor %vm1147_vm6, %vm1148_vm8  ;;  %v1404_v6 = vld [vmem:[%s2501_s2 + $0x18] sm:$0xff] }
 0x1d1   :  { %v1144_v27 = vsub.f32 1.0, %v1143_v23  ;;  %v2413_v29 = vadd.f32 1.0, %v1653_v25  ;;  %1658 = vpow2.f32 %v1402_v18  ;;  %v1227_v1 = vand.u32 2147483647, %v2404_v4 }
 0x1d2   :  { %v1006_v31 = vpop.f32.mrf.mxu1  ;;  %v1159_v35 = vsub.f32 1.0, %v1158_v28  ;;  %v1230_v38 = vor.u32 1.1754944e-38, %v1229_v16  ;;  %vm1163_vm13 = vweird.f32 %v2406_v22 }
 0x1d3   :  { %1660 = vrcp.f32 %v2413_v29  ;;  %v1036_v33 = vadd.f32 %v1035_v24, %v1006_v31  ;;  %v1145_v36 = vmul.f32 %v2402_v19, %v1144_v27  ;;  %v1244_v14 = vand.u32 2147483648, %v2413_v29  ;;  %vm2469_vm2 = vmor %vm1162_vm7, %vm1163_vm13 }
 0x1d4   :  { %v1160_v5 = vmul.f32 %v2406_v22, %v1159_v35  ;;  %v1242_v37 = vand.u32 2147483647, %v2413_v29  ;;  %vm1238_vm0 = vweird.f32 %v2413_v29  ;;  %vm1228_vm1 = vcmp.eq.f32.partialorder %v1227_v1, 8.507059e+37 }
 0x1d5   :  { %v1655_v34 = vpop.eup %1654  ;;  %1662 = vtanh.f32 %v1036_v33  ;;  %v1146_v54 = vadd.f32 %v2402_v19, %v1145_v36  ;;  %v1245_v48 = vor.u32 1.1754944e-38, %v1244_v14 }
 0x1d6   :  { %v1657_v2 = vpop.eup %1656  ;;  %v2417_v40 = vadd.f32 1.0, %v1655_v34  ;;  %v1161_v26 = vadd.f32 %v2406_v22, %v1160_v5  ;;  %vm1243_vm4 = vcmp.eq.f32.partialorder %v1242_v37, 8.507059e+37 }
 0x1d7   :  { %v1659_v45 = vpop.eup %1658  ;;  %v1219_v63 = vmul.f32 %v1657_v2, %v2404_v4  ;;  %vm1224_vm11 = vweird.f32 %v1657_v2  ;;  %v1150_v21 = vsel %vm2446_vm12, %v2402_v19, %v1146_v54 }
 0x1d8   :  { %1664 = vrcp.f32 %v2417_v40  ;;  %v2429_v53 = vadd.f32 1.0, %v1659_v45  ;;  %vm1225_vm14 = vmor %vm1223_vm9, %vm1224_vm11  ;;  %v1155_v49 = vsel %vm2435_vm10, %v1154_v59, %v1150_v21  ;;  %v1165_v13 = vsel %vm2469_vm2, %v2406_v22, %v1161_v26 }
 0x1d9   :  { %v1661_v51 = vpop.eup %1660  ;;  %v1220_v52 = vsub.f32 1.0, %v1219_v63  ;;  %v1305_v25 = vand.u32 2147483648, %v2417_v40  ;;  %v1170_v28 = vsel %vm1167_vm5, %v1169_v10, %v1165_v13  ;;  %vm1299_vm7 = vweird.f32 %v2417_v40 }
 0x1da   :  { %v1234_v55 = vmul.f32 %v1661_v51, %v2413_v29  ;;  %v1064_v61 = vpop.f32.mrf.mxu1  ;;  %1666 = vrcp.f32 %v2429_v53  ;;  %vm1239_vm15 = vweird.f32 %v1661_v51  ;;  %v1303_v33 = vand.u32 2147483647, %v2417_v40 }
 0x1db   :  { %v1221_v62 = vmul.f32 %v1657_v2, %v1220_v52  ;;  %v1094_v8 = vadd.f32 %v1093_v42, %v1064_v61  ;;  %v1663_v15 = vpop.eup %1662  ;;  %vm1240_vm3 = vmor %vm1238_vm0, %vm1239_vm15  ;;  %vm1314_vm9 = vweird.f32 %v2429_v53  ;;  %v1306_v41 = vor.u32 1.1754944e-38, %v1305_v25 }
 0x1dc   :  { %v1235_v3 = vsub.f32 1.0, %v1234_v55  ;;  %v1349_v12 = vmul.f32 %v1663_v15, %v1155_v49  ;;  %v1320_v44 = vand.u32 2147483648, %v2429_v53  ;;  %vm1304_vm11 = vcmp.eq.f32.partialorder %v1303_v33, 8.507059e+37 }
 0x1dd   :  { %v1222_v60 = vadd.f32 %v1657_v2, %v1221_v62  ;;  %1668 = vtanh.f32 %v1094_v8  ;;  %v1318_v45 = vand.u32 2147483647, %v2429_v53 }
 0x1de   :  { %v1665_v30 = vpop.eup %1664  ;;  %v1236_v50 = vmul.f32 %v1661_v51, %v1235_v3  ;;  %v1321_v47 = vor.u32 1.1754944e-38, %v1320_v44 }
 0x1df   :  { %v1295_v39 = vmul.f32 %v1665_v30, %v2417_v40  ;;  %v1226_v46 = vsel %vm1225_vm14, %v1657_v2, %v1222_v60  ;;  %vm1300_vm6 = vweird.f32 %v1665_v30  ;;  %vm1319_vm13 = vcmp.eq.f32.partialorder %v1318_v45, 8.507059e+37 }
 0x1e0   :  { %v1231_v57 = vsel %vm1228_vm1, %v1230_v38, %v1226_v46  ;;  %v1237_v43 = vadd.f32 %v1661_v51, %v1236_v50  ;;  %v1667_v56 = vpop.eup %1666  ;;  %vm1301_vm8 = vmor %vm1299_vm7, %vm1300_vm6 }
 0x1e1   :  { %v1296_v0 = vsub.f32 1.0, %v1295_v39  ;;  %v1347_v9 = vmul.f32 %v1403_v32, %v1231_v57  ;;  %v1310_v17 = vmul.f32 %v1667_v56, %v2429_v53  ;;  %vm1315_vm10 = vweird.f32 %v1667_v56 }
 0x1e2   :  { %v1241_v18 = vsel %vm1240_vm3, %v1661_v51, %v1237_v43  ;;  %vm1316_vm12 = vmor %vm1314_vm9, %vm1315_vm10 }
 0x1e3   :  { %v1297_v19 = vmul.f32 %v1665_v30, %v1296_v0  ;;  %v1351_v4 = vadd.f32 %v1349_v12, %v1347_v9  ;;  %v1246_v23 = vsel %vm1243_vm4, %v1245_v48, %v1241_v18  ;;  %v1669_v24 = vpop.eup %1668  ;;  %v1311_v27 = vsub.f32 1.0, %v1310_v17 }
 0x1e4   :  { %v1348_v29 = vmul.f32 %v1404_v6, %v1246_v23  ;;  %v1350_v31 = vmul.f32 %v1669_v24, %v1170_v28 }
 0x1e5   :  { %v1298_v22 = vadd.f32 %v1665_v30, %v1297_v19  ;;  %1670 = vtanh.f32 %v1351_v4  ;;  %1405 = vst [vmem:[%s2502_s5 + $0x10] sm:$0xff] %v1351_v4  ;;  %v1312_v34 = vmul.f32 %v1667_v56, %v1311_v27 }
 0x1e6   :  { %v1352_v35 = vadd.f32 %v1350_v31, %v1348_v29 }
 0x1e7   :  { %v1302_v36 = vsel %vm1301_vm8, %v1665_v30, %v1298_v22  ;;  %v1313_v2 = vadd.f32 %v1667_v56, %v1312_v34 }
 0x1e8   :  { %1672 = vtanh.f32 %v1352_v35  ;;  %1406 = vst [vmem:[%s2502_s5 + $0x18] sm:$0xff] %v1352_v35  ;;  %v1307_v63 = vsel %vm1304_vm11, %v1306_v41, %v1302_v36 }
 0x1e9   :  { %v1317_v11 = vsel %vm1316_vm12, %v1667_v56, %v1313_v2 }
 0x1ea   :  { %v1322_v52 = vsel %vm1319_vm13, %v1321_v47, %v1317_v11 }
 0x1eb   :  { %v1671_v40 = vpop.eup %1670 }
 0x1ec   :  { %v1355_v16 = vmul.f32 %v1671_v40, %v1307_v63 }
 0x1ee   :  { %1407 = vst [vmem:[%s2503_s4 + $0x10] sm:$0xff] %v1355_v16  ;;  %v1673_v51 = vpop.eup %1672 }
 0x1ef   :  { %v1356_v54 = vmul.f32 %v1673_v51, %v1322_v52 }
 0x1f1   :  { %1408 = vst [vmem:[%s2503_s4 + $0x18] sm:$0xff] %v1356_v54 }

</bundles_post_ra>
